<compile_context>
chip_gen: v6e
topology: v6e:2x2x1
jax: 0.10.0
libtpu: 0.0.40
codegen_flags: <defaults>
</compile_context>

<pallas_src>
import functools
import math

import numpy as np

import jax
import jax.numpy as jnp
from jax.experimental import pallas as pl
from jax.experimental.pallas import tpu as pltpu


# ---------------------------------------------------------------------------
# Host-side constant construction (mirrors the PyTorch module __init__)
# ---------------------------------------------------------------------------
def _get_ml_array(degree):
    ml_list = []
    for i in range(degree):
        l = 2 ** i
        for m in range(l + 1):
            ml_list.append((m, l))
    return np.array(ml_list).T          # (2, n_ml): row 0 = m, row 1 = l


def _generalized_binomial_coeff(a, k):
    return np.prod(a - np.arange(k)) / math.factorial(k)


def _assoc_legendre_coeff(l, m, k):
    return ((-1) ** m * 2 ** l * math.factorial(l) / math.factorial(k) /
            math.factorial(l - k - m) *
            _generalized_binomial_coeff(0.5 * (l + k + m - 1.0), l))


def _sph_harm_coeff(l, m, k):
    return (np.sqrt((2.0 * l + 1.0) * math.factorial(l - m) /
                    (4.0 * np.pi * math.factorial(l + m))) *
            _assoc_legendre_coeff(l, m, k))


def _build_ide_constants(degree):
    """Builds ml_array / mat (as in the torch module) plus kernel constants."""
    ml_array = _get_ml_array(degree)                    # (2, n_ml), ints
    l_max = 2 ** (degree - 1)
    n_ml = ml_array.shape[1]

    mat = np.zeros((l_max + 1, n_ml), dtype=np.float32)
    for i, (m, l) in enumerate(ml_array.T):
        for k in range(l - m + 1):
            mat[k, i] = _sph_harm_coeff(l, m, k)

    # ---- constants consumed by the kernel (hoisted out of the hot loop) ----
    w = 2 * n_ml                       # output width: [real | imag]
    n_m = l_max + 1                    # powers of (x+iy) we build: 0 .. l_max

    # z-power -> SH coefficient matrix, duplicated for the real/imag halves.
    mat2 = np.concatenate([mat, mat], axis=1).astype(np.float32)   # (l_max+1, w)

    # One-hot selector: out col j (real) <- Re{(x+iy)^{m_j}},
    #                   out col n_ml+j  <- Im{(x+iy)^{m_j}}.
    sel = np.zeros((2 * n_m, w), dtype=np.float32)
    for j, m in enumerate(ml_array[0]):
        sel[m, j] = 1.0
        sel[n_m + m, n_ml + j] = 1.0

    # Attenuation: sigma = 0.5*l*(l+1) takes only `degree` distinct values
    # (one per level l = 2^i).  We exp() those `degree` values per row and
    # expand with a one-hot selector, instead of exp'ing all W columns.
    levels = [2 ** i for i in range(degree)]
    n_lev = degree
    neg_sig = np.zeros((n_lev, 1), dtype=np.float32)       # (n_lev, 1)
    sig_sel = np.zeros((n_lev, w), dtype=np.float32)       # (n_lev, w)
    lev_idx = {l: d for d, l in enumerate(levels)}
    for d, l in enumerate(levels):
        neg_sig[d, 0] = -0.5 * l * (l + 1)
    for j, l in enumerate(ml_array[1]):
        d = lev_idx[int(l)]
        sig_sel[d, j] = 1.0
        sig_sel[d, n_ml + j] = 1.0

    return ml_array, mat, mat2, sel, neg_sig, sig_sel


# ---------------------------------------------------------------------------
# Pallas kernel: one batch tile of the IDE
# ---------------------------------------------------------------------------
def _ide_kernel(inp_t_ref, mat2_ref, sel_ref, neg_sig_ref, sig_sel_ref, o_ref,
                *, n_vmz, n_m):
    """inp_t_ref: (4, TB)       rows = x, y, z, kappa_inv (batch on lanes)
       mat2_ref : (n_vmz, W)    z-power -> SH coefficients (VMEM resident)
       sel_ref  : (2*n_m, W)    one-hot Re/Im{(x+iy)^m} selector (resident)
       neg_sig_ref: (n_lev, 1)  -0.5*l*(l+1) per distinct level (resident)
       sig_sel_ref: (n_lev, W)  one-hot level -> output column selector
       o_ref    : (TB, W)       [Re(ide) | Im(ide)]
    """
    x = inp_t_ref[0:1, :]
    y = inp_t_ref[1:2, :]
    z = inp_t_ref[2:3, :]
    kappa_inv = inp_t_ref[3:4, :]

    # Powers z^0 .. z^{n_vmz-1}, built in the transposed (power, batch) layout
    # so every step is a dense full-lane vector multiply.
    zp = [jnp.ones_like(z)]
    for _ in range(n_vmz - 1):
        zp.append(zp[-1] * z)
    zp_t = jnp.concatenate(zp, axis=0)                        # (n_vmz, TB)

    # Real / imaginary parts of (x + i*y)^m, m = 0 .. n_m-1 (no complex dtype
    # in-kernel -> explicit recurrence).
    cre = [jnp.ones_like(x)]
    cim = [jnp.zeros_like(x)]
    for _ in range(n_m - 1):
        re, im = cre[-1], cim[-1]
        cre.append(re * x - im * y)
        cim.append(re * y + im * x)
    cp_t = jnp.concatenate(cre + cim, axis=0)                 # (2*n_m, TB)

    # exp() only over the `degree` distinct attenuation levels (EUP savings),
    # then broadcast to all W output columns with an exact one-hot matmul.
    katt_small = jnp.exp(neg_sig_ref[...] * kappa_inv)        # (n_lev, TB)

    # Expand to the (batch, W) output layout with small MXU matmuls; fp32
    # contraction precision is required because the degree-5 SH polynomial
    # coefficients are O(1e4) and cancel heavily.
    dn = (((0,), (0,)), ((), ()))
    hi = jax.lax.Precision.HIGHEST
    a = jax.lax.dot_general(zp_t, mat2_ref[...], dn, precision=hi,
                            preferred_element_type=jnp.float32)     # (TB, W)
    vm = jax.lax.dot_general(cp_t, sel_ref[...], dn, precision=hi,
                             preferred_element_type=jnp.float32)    # (TB, W)
    katt = jax.lax.dot_general(katt_small, sig_sel_ref[...], dn, precision=hi,
                               preferred_element_type=jnp.float32)  # (TB, W)

    o_ref[...] = (vm * a * katt).astype(o_ref.dtype)


# ---------------------------------------------------------------------------
# Wrapper: padding, transposed packing, grid / BlockSpecs
# ---------------------------------------------------------------------------
def _round_up(x, m):
    return ((x + m - 1) // m) * m


@functools.partial(jax.jit, static_argnames=("tile_b",))
def ide_forward(xyz, kappa_inv, mat2, sel, neg_sig, sig_sel, *, tile_b=2048):
    assert tile_b % 128 == 0
    n_vmz, w = mat2.shape
    n_cp = sel.shape[0]
    n_lev = neg_sig.shape[0]

    batch_shape = xyz.shape[:-1]
    xyz = xyz.reshape(-1, xyz.shape[-1]).astype(jnp.float32)
    kappa_inv = jnp.broadcast_to(
        kappa_inv, batch_shape + (1,)).reshape(-1, 1).astype(jnp.float32)
    b = xyz.shape[0]

    # Grid / tile selection: bound padding waste to < 128 * grid rows while
    # keeping tiles a multiple of 128 (dense lanes for the transposed input,
    # 8-aligned sublanes for the output).
    grid_n = max(1, -(-b // tile_b))
    tile = _round_up(-(-b // grid_n), 128)
    bp = grid_n * tile

    # Pack [x, y, z, kappa_inv] and transpose so per-row scalars live on the
    # fast (lane) axis in-kernel.  Zero padding keeps the pad rows finite.
    inp = jnp.concatenate([xyz, kappa_inv], axis=-1)          # (b, 4)
    if bp != b:
        inp = jnp.pad(inp, ((0, bp - b), (0, 0)))
    inp_t = inp.T                                             # (4, bp)

    kernel = functools.partial(_ide_kernel, n_vmz=n_vmz, n_m=n_cp // 2)
    out = pl.pallas_call(
        kernel,
        out_shape=jax.ShapeDtypeStruct((bp, w), jnp.float32),
        grid=(grid_n,),
        in_specs=[
            pl.BlockSpec((4, tile), lambda i: (0, i)),       # packed inputs (T)
            pl.BlockSpec((n_vmz, w), lambda i: (0, 0)),      # mat2 (resident)
            pl.BlockSpec((n_cp, w), lambda i: (0, 0)),       # selector (resident)
            pl.BlockSpec((n_lev, 1), lambda i: (0, 0)),      # -sigma levels
            pl.BlockSpec((n_lev, w), lambda i: (0, 0)),      # level selector
        ],
        out_specs=pl.BlockSpec((tile, w), lambda i: (i, 0)),
        compiler_params=pltpu.CompilerParams(
            dimension_semantics=("parallel",),               # megacore-shard batch
            vmem_limit_bytes=32 * 1024 * 1024,
        ),
        cost_estimate=pl.CostEstimate(
            flops=2 * bp * w * (n_vmz + n_cp + n_lev) + 2 * bp * w
                  + bp * (n_vmz + 6 * (n_cp // 2) + n_lev),
            transcendentals=bp * n_lev,
            bytes_accessed=4 * (4 * bp + w * bp
                                + w * (n_vmz + n_cp + n_lev) + n_lev),
        ),
    )(inp_t, mat2, sel, neg_sig, sig_sel)

    return out[:b].reshape(*batch_shape, w)


class IntegratedDirectionalEncoding:
    """JAX/Pallas port of the PyTorch IntegratedDirectionalEncoding module."""

    def __init__(self, in_channels, config, tile_b=2048):
        assert in_channels == 3, "IDE expects 3-D direction vectors"
        degree = config.get("degree", 5)
        (self.ml_array, self.mat, mat2, sel,
         neg_sig, sig_sel) = _build_ide_constants(degree)
        self.mat2 = jnp.asarray(mat2)
        self.sel = jnp.asarray(sel)
        self.neg_sig = jnp.asarray(neg_sig)
        self.sig_sel = jnp.asarray(sig_sel)
        self.n_input_dims = in_channels
        self.n_output_dims = 2 * self.ml_array.shape[1]
        self.tile_b = tile_b

    def __call__(self, xyz, kappa_inv):
        return ide_forward(xyz, kappa_inv, self.mat2, self.sel,
                           self.neg_sig, self.sig_sel, tile_b=self.tile_b)


# ---------------------------------------------------------------------------
# Pure-JAX reference (direct port of the torch forward, complex arithmetic)
# ---------------------------------------------------------------------------
def _reference_ide(xyz, kappa_inv, ml_array, mat):
    x = xyz[..., 0:1]
    y = xyz[..., 1:2]
    z = xyz[..., 2:3]
    vmz = jnp.concatenate([z ** i for i in range(mat.shape[0])], axis=-1)
    vmxy = jnp.concatenate(
        [(x + 1j * y) ** int(m) for m in np.asarray(ml_array)[0, :]], axis=-1)
    sph_harms = vmxy * jnp.einsum(
        "...i,ij->...j", vmz, jnp.asarray(mat, jnp.float32),
        precision=jax.lax.Precision.HIGHEST)
    sigma = 0.5 * ml_array[1, :] * (ml_array[1, :] + 1)
    ide = sph_harms * jnp.exp(-jnp.asarray(sigma, jnp.float32) * kappa_inv)
    return jnp.concatenate([jnp.real(ide), jnp.imag(ide)], axis=-1)


if __name__ == "__main__":
    config = {"degree": 5}
    enc = IntegratedDirectionalEncoding(3, config, tile_b=128)

    batch = 200                         # small; not a tile multiple on purpose
    key = jax.random.PRNGKey(0)
    kdir, kkap = jax.random.split(key)
    xyz = jax.random.normal(kdir, (batch, 3), jnp.float32)
    xyz = xyz / jnp.linalg.norm(xyz, axis=-1, keepdims=True)
    kappa_inv = 0.1 + 0.25 * jax.random.uniform(kkap, (batch, 1), jnp.float32)

    out = jax.block_until_ready(enc(xyz, kappa_inv))

    ref = _reference_ide(xyz, kappa_inv, enc.ml_array, enc.mat)
    assert out.shape == (batch, enc.n_output_dims), out.shape
    max_err = float(jnp.max(jnp.abs(out - ref)))
    assert bool(jnp.allclose(out, ref, rtol=2e-3, atol=2e-3)), (
        f"kernel/reference mismatch: max abs err {max_err}")
    print("KERNEL_OK")
</pallas_src>

<mosaic_0001>
module attributes {stable_mosaic.version = 11 : i64} {
  func.func @_ide_kernel(%arg0: i32, %arg1: memref<4x128xf32, #tpu.memory_space<vmem>>, %arg2: memref<17x72xf32, #tpu.memory_space<vmem>>, %arg3: memref<34x72xf32, #tpu.memory_space<vmem>>, %arg4: memref<5x1xf32, #tpu.memory_space<vmem>>, %arg5: memref<5x72xf32, #tpu.memory_space<vmem>>, %arg6: memref<128x72xf32, #tpu.memory_space<vmem>>) attributes {dimension_semantics = [#tpu.dimension_semantics<parallel>], iteration_bounds = array<i64: 2>, scalar_prefetch = 0 : i64, scratch_operands = 0 : i64, tpu.core_type = #tpu.core_type<tc>, window_params = [{transform_indices = @transform_0, window_bounds = array<i64: 4, 128>}, {pipeline_mode = #tpu.pipeline_mode<synchronous>, transform_indices = @transform_1, window_bounds = array<i64: 17, 72>}, {pipeline_mode = #tpu.pipeline_mode<synchronous>, transform_indices = @transform_2, window_bounds = array<i64: 34, 72>}, {pipeline_mode = #tpu.pipeline_mode<synchronous>, transform_indices = @transform_3, window_bounds = array<i64: 5, 1>}, {pipeline_mode = #tpu.pipeline_mode<synchronous>, transform_indices = @transform_4, window_bounds = array<i64: 5, 72>}, {transform_indices = @transform_5, window_bounds = array<i64: 128, 72>}]} {
    %c0 = arith.constant 0 : index
    %c0_0 = arith.constant 0 : index
    %0 = vector.load %arg1[%c0, %c0_0] : memref<4x128xf32, #tpu.memory_space<vmem>>, vector<1x128xf32>
    %c1 = arith.constant 1 : index
    %c0_1 = arith.constant 0 : index
    %1 = vector.load %arg1[%c1, %c0_1] : memref<4x128xf32, #tpu.memory_space<vmem>>, vector<1x128xf32>
    %c2 = arith.constant 2 : index
    %c0_2 = arith.constant 0 : index
    %2 = vector.load %arg1[%c2, %c0_2] : memref<4x128xf32, #tpu.memory_space<vmem>>, vector<1x128xf32>
    %c3 = arith.constant 3 : index
    %c0_3 = arith.constant 0 : index
    %3 = vector.load %arg1[%c3, %c0_3] : memref<4x128xf32, #tpu.memory_space<vmem>>, vector<1x128xf32>
    %cst = arith.constant 1.000000e+00 : f32
    %4 = vector.broadcast %cst : f32 to vector<1x128xf32>
    %5 = arith.mulf %4, %2 : vector<1x128xf32>
    %6 = arith.mulf %5, %2 : vector<1x128xf32>
    %7 = arith.mulf %6, %2 : vector<1x128xf32>
    %8 = arith.mulf %7, %2 : vector<1x128xf32>
    %9 = arith.mulf %8, %2 : vector<1x128xf32>
    %10 = arith.mulf %9, %2 : vector<1x128xf32>
    %11 = arith.mulf %10, %2 : vector<1x128xf32>
    %12 = arith.mulf %11, %2 : vector<1x128xf32>
    %13 = arith.mulf %12, %2 : vector<1x128xf32>
    %14 = arith.mulf %13, %2 : vector<1x128xf32>
    %15 = arith.mulf %14, %2 : vector<1x128xf32>
    %16 = arith.mulf %15, %2 : vector<1x128xf32>
    %17 = arith.mulf %16, %2 : vector<1x128xf32>
    %18 = arith.mulf %17, %2 : vector<1x128xf32>
    %19 = arith.mulf %18, %2 : vector<1x128xf32>
    %20 = arith.mulf %19, %2 : vector<1x128xf32>
    %21 = tpu.concatenate %4, %5, %6, %7, %8, %9, %10, %11, %12, %13, %14, %15, %16, %17, %18, %19 in 0 : vector<1x128xf32>, vector<1x128xf32>, vector<1x128xf32>, vector<1x128xf32>, vector<1x128xf32>, vector<1x128xf32>, vector<1x128xf32>, vector<1x128xf32>, vector<1x128xf32>, vector<1x128xf32>, vector<1x128xf32>, vector<1x128xf32>, vector<1x128xf32>, vector<1x128xf32>, vector<1x128xf32>, vector<1x128xf32> -> vector<16x128xf32>
    %22 = tpu.concatenate %21, %20 in 0 : vector<16x128xf32>, vector<1x128xf32> -> vector<17x128xf32>
    %cst_4 = arith.constant 1.000000e+00 : f32
    %23 = vector.broadcast %cst_4 : f32 to vector<1x128xf32>
    %cst_5 = arith.constant 0.000000e+00 : f32
    %24 = vector.broadcast %cst_5 : f32 to vector<1x128xf32>
    %25 = arith.mulf %23, %0 : vector<1x128xf32>
    %26 = arith.mulf %24, %1 : vector<1x128xf32>
    %27 = arith.subf %25, %26 : vector<1x128xf32>
    %28 = arith.mulf %23, %1 : vector<1x128xf32>
    %29 = arith.mulf %24, %0 : vector<1x128xf32>
    %30 = arith.addf %28, %29 : vector<1x128xf32>
    %31 = arith.mulf %27, %0 : vector<1x128xf32>
    %32 = arith.mulf %30, %1 : vector<1x128xf32>
    %33 = arith.subf %31, %32 : vector<1x128xf32>
    %34 = arith.mulf %27, %1 : vector<1x128xf32>
    %35 = arith.mulf %30, %0 : vector<1x128xf32>
    %36 = arith.addf %34, %35 : vector<1x128xf32>
    %37 = arith.mulf %33, %0 : vector<1x128xf32>
    %38 = arith.mulf %36, %1 : vector<1x128xf32>
    %39 = arith.subf %37, %38 : vector<1x128xf32>
    %40 = arith.mulf %33, %1 : vector<1x128xf32>
    %41 = arith.mulf %36, %0 : vector<1x128xf32>
    %42 = arith.addf %40, %41 : vector<1x128xf32>
    %43 = arith.mulf %39, %0 : vector<1x128xf32>
    %44 = arith.mulf %42, %1 : vector<1x128xf32>
    %45 = arith.subf %43, %44 : vector<1x128xf32>
    %46 = arith.mulf %39, %1 : vector<1x128xf32>
    %47 = arith.mulf %42, %0 : vector<1x128xf32>
    %48 = arith.addf %46, %47 : vector<1x128xf32>
    %49 = arith.mulf %45, %0 : vector<1x128xf32>
    %50 = arith.mulf %48, %1 : vector<1x128xf32>
    %51 = arith.subf %49, %50 : vector<1x128xf32>
    %52 = arith.mulf %45, %1 : vector<1x128xf32>
    %53 = arith.mulf %48, %0 : vector<1x128xf32>
    %54 = arith.addf %52, %53 : vector<1x128xf32>
    %55 = arith.mulf %51, %0 : vector<1x128xf32>
    %56 = arith.mulf %54, %1 : vector<1x128xf32>
    %57 = arith.subf %55, %56 : vector<1x128xf32>
    %58 = arith.mulf %51, %1 : vector<1x128xf32>
    %59 = arith.mulf %54, %0 : vector<1x128xf32>
    %60 = arith.addf %58, %59 : vector<1x128xf32>
    %61 = arith.mulf %57, %0 : vector<1x128xf32>
    %62 = arith.mulf %60, %1 : vector<1x128xf32>
    %63 = arith.subf %61, %62 : vector<1x128xf32>
    %64 = arith.mulf %57, %1 : vector<1x128xf32>
    %65 = arith.mulf %60, %0 : vector<1x128xf32>
    %66 = arith.addf %64, %65 : vector<1x128xf32>
    %67 = arith.mulf %63, %0 : vector<1x128xf32>
    %68 = arith.mulf %66, %1 : vector<1x128xf32>
    %69 = arith.subf %67, %68 : vector<1x128xf32>
    %70 = arith.mulf %63, %1 : vector<1x128xf32>
    %71 = arith.mulf %66, %0 : vector<1x128xf32>
    %72 = arith.addf %70, %71 : vector<1x128xf32>
    %73 = arith.mulf %69, %0 : vector<1x128xf32>
    %74 = arith.mulf %72, %1 : vector<1x128xf32>
    %75 = arith.subf %73, %74 : vector<1x128xf32>
    %76 = arith.mulf %69, %1 : vector<1x128xf32>
    %77 = arith.mulf %72, %0 : vector<1x128xf32>
    %78 = arith.addf %76, %77 : vector<1x128xf32>
    %79 = arith.mulf %75, %0 : vector<1x128xf32>
    %80 = arith.mulf %78, %1 : vector<1x128xf32>
    %81 = arith.subf %79, %80 : vector<1x128xf32>
    %82 = arith.mulf %75, %1 : vector<1x128xf32>
    %83 = arith.mulf %78, %0 : vector<1x128xf32>
    %84 = arith.addf %82, %83 : vector<1x128xf32>
    %85 = arith.mulf %81, %0 : vector<1x128xf32>
    %86 = arith.mulf %84, %1 : vector<1x128xf32>
    %87 = arith.subf %85, %86 : vector<1x128xf32>
    %88 = arith.mulf %81, %1 : vector<1x128xf32>
    %89 = arith.mulf %84, %0 : vector<1x128xf32>
    %90 = arith.addf %88, %89 : vector<1x128xf32>
    %91 = arith.mulf %87, %0 : vector<1x128xf32>
    %92 = arith.mulf %90, %1 : vector<1x128xf32>
    %93 = arith.subf %91, %92 : vector<1x128xf32>
    %94 = arith.mulf %87, %1 : vector<1x128xf32>
    %95 = arith.mulf %90, %0 : vector<1x128xf32>
    %96 = arith.addf %94, %95 : vector<1x128xf32>
    %97 = arith.mulf %93, %0 : vector<1x128xf32>
    %98 = arith.mulf %96, %1 : vector<1x128xf32>
    %99 = arith.subf %97, %98 : vector<1x128xf32>
    %100 = arith.mulf %93, %1 : vector<1x128xf32>
    %101 = arith.mulf %96, %0 : vector<1x128xf32>
    %102 = arith.addf %100, %101 : vector<1x128xf32>
    %103 = arith.mulf %99, %0 : vector<1x128xf32>
    %104 = arith.mulf %102, %1 : vector<1x128xf32>
    %105 = arith.subf %103, %104 : vector<1x128xf32>
    %106 = arith.mulf %99, %1 : vector<1x128xf32>
    %107 = arith.mulf %102, %0 : vector<1x128xf32>
    %108 = arith.addf %106, %107 : vector<1x128xf32>
    %109 = arith.mulf %105, %0 : vector<1x128xf32>
    %110 = arith.mulf %108, %1 : vector<1x128xf32>
    %111 = arith.subf %109, %110 : vector<1x128xf32>
    %112 = arith.mulf %105, %1 : vector<1x128xf32>
    %113 = arith.mulf %108, %0 : vector<1x128xf32>
    %114 = arith.addf %112, %113 : vector<1x128xf32>
    %115 = arith.mulf %111, %0 : vector<1x128xf32>
    %116 = arith.mulf %114, %1 : vector<1x128xf32>
    %117 = arith.subf %115, %116 : vector<1x128xf32>
    %118 = arith.mulf %111, %1 : vector<1x128xf32>
    %119 = arith.mulf %114, %0 : vector<1x128xf32>
    %120 = arith.addf %118, %119 : vector<1x128xf32>
    %121 = tpu.concatenate %23, %27, %33, %39, %45, %51, %57, %63, %69, %75, %81, %87, %93, %99, %105, %111 in 0 : vector<1x128xf32>, vector<1x128xf32>, vector<1x128xf32>, vector<1x128xf32>, vector<1x128xf32>, vector<1x128xf32>, vector<1x128xf32>, vector<1x128xf32>, vector<1x128xf32>, vector<1x128xf32>, vector<1x128xf32>, vector<1x128xf32>, vector<1x128xf32>, vector<1x128xf32>, vector<1x128xf32>, vector<1x128xf32> -> vector<16x128xf32>
    %122 = tpu.concatenate %117, %24, %30, %36, %42, %48, %54, %60, %66, %72, %78, %84, %90, %96, %102, %108 in 0 : vector<1x128xf32>, vector<1x128xf32>, vector<1x128xf32>, vector<1x128xf32>, vector<1x128xf32>, vector<1x128xf32>, vector<1x128xf32>, vector<1x128xf32>, vector<1x128xf32>, vector<1x128xf32>, vector<1x128xf32>, vector<1x128xf32>, vector<1x128xf32>, vector<1x128xf32>, vector<1x128xf32>, vector<1x128xf32> -> vector<16x128xf32>
    %123 = tpu.concatenate %114, %120 in 0 : vector<1x128xf32>, vector<1x128xf32> -> vector<2x128xf32>
    %124 = tpu.concatenate %121, %122, %123 in 0 : vector<16x128xf32>, vector<16x128xf32>, vector<2x128xf32> -> vector<34x128xf32>
    %c0_6 = arith.constant 0 : index
    %c0_7 = arith.constant 0 : index
    %125 = vector.load %arg4[%c0_6, %c0_7] : memref<5x1xf32, #tpu.memory_space<vmem>>, vector<5x1xf32>
    %126 = vector.broadcast %125 : vector<5x1xf32> to vector<5x128xf32>
    %127 = vector.broadcast %3 : vector<1x128xf32> to vector<5x128xf32>
    %128 = arith.mulf %126, %127 : vector<5x128xf32>
    %129 = math.exp %128 : vector<5x128xf32>
    %c0_8 = arith.constant 0 : index
    %c0_9 = arith.constant 0 : index
    %130 = vector.load %arg2[%c0_8, %c0_9] : memref<17x72xf32, #tpu.memory_space<vmem>>, vector<17x72xf32>
    %cst_10 = arith.constant dense<0.000000e+00> : vector<128x72xf32>
    %131 = tpu.matmul %22, %130, %cst_10 {dimension_numbers = #tpu.dot_dimension_numbers<[0], [0], [1], [1], [0, 1, 1, 1], [], []>, precision = #tpu.contract_precision<fp32>} : vector<17x128xf32>, vector<17x72xf32>, vector<128x72xf32> -> vector<128x72xf32>
    %c0_11 = arith.constant 0 : index
    %c0_12 = arith.constant 0 : index
    %132 = vector.load %arg3[%c0_11, %c0_12] : memref<34x72xf32, #tpu.memory_space<vmem>>, vector<34x72xf32>
    %cst_13 = arith.constant dense<0.000000e+00> : vector<128x72xf32>
    %133 = tpu.matmul %124, %132, %cst_13 {dimension_numbers = #tpu.dot_dimension_numbers<[0], [0], [1], [1], [0, 1, 1, 1], [], []>, precision = #tpu.contract_precision<fp32>} : vector<34x128xf32>, vector<34x72xf32>, vector<128x72xf32> -> vector<128x72xf32>
    %c0_14 = arith.constant 0 : index
    %c0_15 = arith.constant 0 : index
    %134 = vector.load %arg5[%c0_14, %c0_15] : memref<5x72xf32, #tpu.memory_space<vmem>>, vector<5x72xf32>
    %cst_16 = arith.constant dense<0.000000e+00> : vector<128x72xf32>
    %135 = tpu.matmul %129, %134, %cst_16 {dimension_numbers = #tpu.dot_dimension_numbers<[0], [0], [1], [1], [0, 1, 1, 1], [], []>, precision = #tpu.contract_precision<fp32>} : vector<5x128xf32>, vector<5x72xf32>, vector<128x72xf32> -> vector<128x72xf32>
    %136 = arith.mulf %133, %131 : vector<128x72xf32>
    %137 = arith.mulf %136, %135 : vector<128x72xf32>
    %c0_17 = arith.constant 0 : index
    %c0_18 = arith.constant 0 : index
    %138 = vector.load %arg6[%c0_17, %c0_18] : memref<128x72xf32, #tpu.memory_space<vmem>>, vector<128x72xf32>
    tpu.vector_store %arg6[%c0_17, %c0_18], %137 {strides = array<i32>} : memref<128x72xf32, #tpu.memory_space<vmem>>, vector<128x72xf32>,
    return
  }
  func.func @transform_0(%arg0: i32) -> (i32, i32) {
    %c0_i32 = arith.constant 0 : i32
    %c0_i32_0 = arith.constant 0 : i32
    return %c0_i32, %arg0 : i32, i32
  }
  func.func @transform_1(%arg0: i32) -> (i32, i32) {
    %c0_i32 = arith.constant 0 : i32
    %c0_i32_0 = arith.constant 0 : i32
    %c0_i32_1 = arith.constant 0 : i32
    return %c0_i32, %c0_i32_0 : i32, i32
  }
  func.func @transform_2(%arg0: i32) -> (i32, i32) {
    %c0_i32 = arith.constant 0 : i32
    %c0_i32_0 = arith.constant 0 : i32
    %c0_i32_1 = arith.constant 0 : i32
    return %c0_i32, %c0_i32_0 : i32, i32
  }
  func.func @transform_3(%arg0: i32) -> (i32, i32) {
    %c0_i32 = arith.constant 0 : i32
    %c0_i32_0 = arith.constant 0 : i32
    %c0_i32_1 = arith.constant 0 : i32
    return %c0_i32, %c0_i32_0 : i32, i32
  }
  func.func @transform_4(%arg0: i32) -> (i32, i32) {
    %c0_i32 = arith.constant 0 : i32
    %c0_i32_0 = arith.constant 0 : i32
    %c0_i32_1 = arith.constant 0 : i32
    return %c0_i32, %c0_i32_0 : i32, i32
  }
  func.func @transform_5(%arg0: i32) -> (i32, i32) {
    %c0_i32 = arith.constant 0 : i32
    %c0_i32_0 = arith.constant 0 : i32
    return %arg0, %c0_i32 : i32, i32
  }
}

</mosaic_0001>

<bundles_post_ra>
// kernel: ide_forward.1
= control target key start
LH: loop header
LB: loop body
LE: loop exit
PB: predicated region body
PF: predicated region fallthrough
CT: control target
= control target key end

     0   :  { %10 = vsyncpa [#allocation3], 0  ;;  %s5262_s18 = smov 0   ;;  %s7026_s0 = inlined_call_operand.vmem [shape: f32[4,256], index: 0, kind: input, shape index: {}]   ;;  %s7027_s1 = inlined_call_operand.vmem [shape: f32[17,72], index: 1, kind: input, shape index: {}]   ;;  %s7028_s2 = inlined_call_operand.hbm [shape: f32[34,72], index: 2, kind: input, shape index: {}]   ;;  %s7029_s3 = inlined_call_operand.vmem [shape: f32[5,1], index: 3, kind: input, shape index: {}]   ;;  %s7030_s4 = inlined_call_operand.vmem [shape: f32[5,72], index: 4, kind: input, shape index: {}]   ;;  %s7031_s5 = inlined_call_operand.vmem [shape: f32[256,72], index: 5, kind: output, shape index: {}]  }
   0x1 LB: > { %s5268_s19 = sadd.s32 4294967295, %s5226_s18   ;;  %p4271_p0 = scmp.ge.s32.totalorder %s5226_s18, 1  ;;  %s5226_s18 = sphi %s5262_s18, %s16_s18  }
   0x2   : > { %p157_p1 = scmp.lt.s32.totalorder %s5226_s18, 3  ;;  %s5228_s20 = smov [#allocation2]  }
   0x3   : > { %s172_s21 = sshll.u32 %s5228_s20, 4  ;;  %p5172_p3 = scmp.eq.s32.totalorder %s5268_s19, 0  ;;  %s173_s21 = int_to_ptr.vmem [resolvable:$true] %s172_s21 }
   0x4   : > { %p5272_p2 = pnand %p4271_p0, %p157_p1  ;;  %s5201_s23 = scalar_lea.vmem %s173_s21, 640 }
   0x5   : > { %p5202_p7 = scmp.ne.s32.totalorder %s173_s21, %s5201_s23  ;;  %p5209_p10 = scmp.lt.s32.totalorder %s173_s21, %s173_s21 }
   0x6   : > { %p5168_p4 = pneg %p5272_p2  ;;  %p5210_p11 = scmp.lt.s32.totalorder %s5201_s23, %s5201_s23 }
   0x8   : > { %p5169_p5 = pnand %p5172_p3, %p5168_p4  ;;  %p5211_p12 = por %p5210_p11, %p5209_p10 }
   0xa   : > { %p5192_p6 = pneg %p5169_p5 }
   0xc   : > { %p5204_p8 = pnand %p5202_p7, %p5192_p6 }
   0xe   : > { %p5205_p9 = pneg %p5204_p8 }
  0x10   : > { %p5212_p13 = pnand %p5211_p12, %p5205_p9 }
  0x12   : > { %5215 = shalt.err (!%p5212_p13)
}
  0x13   : > { %s5229_s24 = smov 128   ;;  %s5230_s25 = smov 8  }
  0x14   : > { %5171 = dma.hbm_to_vmem [thread:$0]  (!%p5169_p5), %s7028_s2, 640, %s173_s21, [#allocation3], %s5229_s24, %s5229_s24, %s5230_s25  }
  0x15   : > { %201 = sbr.rel (%p5272_p2) target bundleno = 766 (0x2fe), region = 40 }
  0x1a   : > { %5221 = dma.done.wait (%p5172_p3), [#allocation3], 640  }
  0x1b   : > { %5223 = vsyncadd (%p5172_p3), [#allocation3], 4294966656  ;;  %p228_p0 = scmp.lt.s32.totalorder %s5268_s19, 1  ;;  %vm299_vm0 = vcmask 1040384   ;;  %vm301_vm1 = vcmask 1041408   ;;  %vm303_vm2 = vcmask 1042432  }
  0x1c   : > { %vm305_vm3 = vcmask 1043456   ;;  %vm307_vm4 = vcmask 1044480   ;;  %vm309_vm5 = vcmask 1045504   ;;  %vm311_vm6 = vcmask 1046528   ;;  %s4277_s20 = sshll.u32 %s5268_s19, 4 }
  0x1d   : > { %s229_s28 = scalar_select %p228_p0, %s5268_s19, 1  ;;  %vm575_vm7 = vcmask 138240   ;;  %vm1781_vm8 = vcmask 277504   ;;  %vm3009_vm9 = vcmask 39936   ;;  %vm4184_vm10 = vcmask 588800  }
  0x1e   : > { %p233_p1 = scmp.lt.s32.totalorder %s4277_s20, 31 }
  0x1f   : > { %s4276_s29 = sshll.u32 %s229_s28, 2 }
  0x20   : > { %s5295_s7 = scalar_lea.vmem %s7026_s0, %s4276_s29  ;;  %s7212_s20 = smov (!%p233_p1, %s4277_s20), 31 }
  0x21   : > { %v5298_v0 = vld [vmem:[%s5295_s7 + $0x2] sm:$0x1]  ;;  %v5301_v1 = vld [vmem:[%s5295_s7] sm:$0x1]  ;;  %v5304_v2 = vld [vmem:[%s5295_s7 + $0x1] sm:$0x1] }
  0x22   : > { %v242_v3 = vmul.f32 %v5298_v0, %v5298_v0  ;;  %v258_v4 = vrot.slane %v5298_v0, 7  ;;  %v320_v5 = vmul.f32 0.0, %v5304_v2  ;;  %v322_v6 = vmul.f32 0.0, %v5301_v1  ;;  %s4278_s19 = sshll.u32 %s7212_s20, 3 }
  0x23   : > { %s6933_s23 = scalar_lea.vmem %s7031_s5, %s4278_s19 }
  0x24   : > { %v243_v7 = vmul.f32 %v242_v3, %v5298_v0  ;;  %v261_v8 = vrot.slane %v242_v3, 6  ;;  %v300_v9 = vsel %vm299_vm0, 1.0, %v258_v4  ;;  %v321_v10 = vsub.f32 %v5301_v1, %v320_v5 }
  0x25   : > { %v5315_v11 = vadd.f32 %v322_v6, %v5304_v2 }
  0x26   : > { %v244_v12 = vmul.f32 %v243_v7, %v5298_v0  ;;  %v264_v13 = vrot.slane %v243_v7, 5  ;;  %v302_v14 = vsel %vm301_vm1, %v300_v9, %v261_v8  ;;  %v324_v15 = vmul.f32 %v321_v10, %v5301_v1 }
  0x27   : > { %v325_v16 = vmul.f32 %v5315_v11, %v5304_v2  ;;  %v327_v17 = vmul.f32 %v321_v10, %v5304_v2  ;;  %v328_v18 = vmul.f32 %v5315_v11, %v5301_v1  ;;  %v415_v19 = vrot.slane %v321_v10, 7 }
  0x28   : > { %v245_v20 = vmul.f32 %v244_v12, %v5298_v0  ;;  %v267_v21 = vrot.slane %v244_v12, 4  ;;  %v304_v22 = vsel %vm303_vm2, %v302_v14, %v264_v13 }
  0x29   : > { %v326_v23 = vsub.f32 %v324_v15, %v325_v16  ;;  %v5327_v24 = vadd.f32 %v328_v18, %v327_v17  ;;  %v456_v28 = vsel %vm299_vm0, 1.0, %v415_v19 }
  0x2a   : > { %v246_v25 = vmul.f32 %v245_v20, %v5298_v0  ;;  %v270_v26 = vrot.slane %v245_v20, 3  ;;  %v306_v27 = vsel %vm305_vm3, %v304_v22, %v267_v21 }
  0x2b   : > { %v330_v29 = vmul.f32 %v326_v23, %v5301_v1  ;;  %v331_v30 = vmul.f32 %v5327_v24, %v5304_v2  ;;  %v333_v31 = vmul.f32 %v326_v23, %v5304_v2  ;;  %v334_v32 = vmul.f32 %v5327_v24, %v5301_v1 }
  0x2c   : > { %v247_v33 = vmul.f32 %v246_v25, %v5298_v0  ;;  %v273_v34 = vrot.slane %v246_v25, 2  ;;  %v308_v35 = vsel %vm307_vm4, %v306_v27, %v270_v26  ;;  %v418_v36 = vrot.slane %v326_v23, 6 }
  0x2d   : > { %v332_v37 = vsub.f32 %v330_v29, %v331_v30  ;;  %v5340_v38 = vadd.f32 %v334_v32, %v333_v31 }
  0x2e   : > { %v276_v39 = vrot.slane %v247_v33, 1  ;;  %v310_v40 = vsel %vm309_vm5, %v308_v35, %v273_v34  ;;  %v248_v41 = vmul.f32 %v247_v33, %v5298_v0  ;;  %v457_v42 = vsel %vm301_vm1, %v456_v28, %v418_v36 }
  0x2f   : > { %v336_v43 = vmul.f32 %v332_v37, %v5301_v1  ;;  %v337_v44 = vmul.f32 %v5340_v38, %v5304_v2  ;;  %v339_v45 = vmul.f32 %v332_v37, %v5304_v2  ;;  %v340_v46 = vmul.f32 %v5340_v38, %v5301_v1 }
  0x30   : > { %v312_v47 = vsel %vm311_vm6, %v310_v40, %v276_v39  ;;  %v249_v48 = vmul.f32 %v248_v41, %v5298_v0  ;;  %v421_v49 = vrot.slane %v332_v37, 5 }
  0x31   : > { %543 = vxpose.xlu0.b32.start [1/3] (short) %v312_v47, 128  ;;  %v338_v50 = vsub.f32 %v336_v43, %v337_v44  ;;  %v5353_v51 = vadd.f32 %v340_v46, %v339_v45 }
  0x32   : > { %v250_v52 = vmul.f32 %v249_v48, %v5298_v0  ;;  %v279_v53 = vrot.slane %v249_v48, 7  ;;  %v458_v54 = vsel %vm303_vm2, %v457_v42, %v421_v49 }
  0x33   : > { %v342_v55 = vmul.f32 %v338_v50, %v5301_v1  ;;  %v343_v56 = vmul.f32 %v5353_v51, %v5304_v2  ;;  %v345_v57 = vmul.f32 %v338_v50, %v5304_v2  ;;  %v346_v58 = vmul.f32 %v5353_v51, %v5301_v1 }
  0x34   : > { %v251_v59 = vmul.f32 %v250_v52, %v5298_v0  ;;  %v282_v60 = vrot.slane %v250_v52, 6  ;;  %v313_v61 = vsel %vm299_vm0, %v248_v41, %v279_v53  ;;  %v424_v62 = vrot.slane %v338_v50, 4 }
  0x35   : > { %v344_v63 = vsub.f32 %v342_v55, %v343_v56  ;;  %v5365_v3 = vadd.f32 %v346_v58, %v345_v57 }
  0x36   : > { %v252_v4 = vmul.f32 %v251_v59, %v5298_v0  ;;  %v285_v5 = vrot.slane %v251_v59, 5  ;;  %v314_v6 = vsel %vm301_vm1, %v313_v61, %v282_v60  ;;  %v459_v7 = vsel %vm305_vm3, %v458_v54, %v424_v62  ;;  %v542_v62 = vld [vmem:[%s7027_s1 + $0x10] sm:$0x1] }
  0x37   : > { %v348_v8 = vmul.f32 %v344_v63, %v5301_v1  ;;  %v349_v9 = vmul.f32 %v5365_v3, %v5304_v2  ;;  %v351_v10 = vmul.f32 %v344_v63, %v5304_v2  ;;  %v352_v12 = vmul.f32 %v5365_v3, %v5301_v1 }
  0x38   : > { %v253_v13 = vmul.f32 %v252_v4, %v5298_v0  ;;  %v288_v14 = vrot.slane %v252_v4, 4  ;;  %v315_v15 = vsel %vm303_vm2, %v314_v6, %v285_v5  ;;  %v427_v16 = vrot.slane %v344_v63, 3 }
  0x39   : > { %v350_v17 = vsub.f32 %v348_v8, %v349_v9  ;;  %v5378_v18 = vadd.f32 %v352_v12, %v351_v10  ;;  %v625_v8 = vsel %vm299_vm0, %v542_v62, 0 }
  0x3a   : > { %v254_v19 = vmul.f32 %v253_v13, %v5298_v0  ;;  %v291_v20 = vrot.slane %v253_v13, 3  ;;  %v316_v21 = vsel %vm305_vm3, %v315_v15, %v288_v14  ;;  %v460_v22 = vsel %vm307_vm4, %v459_v7, %v427_v16  ;;  %v541_v13 = vld [vmem:[%s7027_s1 + $0x8] sm:$0xff] }
  0x3b   : > { %v354_v23 = vmul.f32 %v350_v17, %v5301_v1  ;;  %v355_v25 = vmul.f32 %v5378_v18, %v5304_v2  ;;  %v357_v26 = vmul.f32 %v350_v17, %v5304_v2  ;;  %v358_v27 = vmul.f32 %v5378_v18, %v5301_v1 }
  0x3c   : > { %v255_v28 = vmul.f32 %v254_v19, %v5298_v0  ;;  %v294_v29 = vrot.slane %v254_v19, 2  ;;  %v317_v30 = vsel %vm307_vm4, %v316_v21, %v291_v20  ;;  %v430_v31 = vrot.slane %v350_v17, 2  ;;  %v540_v21 = vld [vmem:[%s7027_s1] sm:$0xff] }
  0x3d   : > { %v356_v32 = vsub.f32 %v354_v23, %v355_v25  ;;  %v5391_v33 = vadd.f32 %v358_v27, %v357_v26  ;;  %v5431_v12 = vand.u32 4294901760, %v625_v8  ;;  %v5437_v15 = vand.u32 4294901760, %v541_v13 }
  0x3e   : > { %v297_v34 = vrot.slane %v255_v28, 1  ;;  %v318_v35 = vsel %vm309_vm5, %v317_v30, %v294_v29  ;;  %v461_v36 = vsel %vm309_vm5, %v460_v22, %v430_v31  ;;  %v256_v44 = vmul.f32 %v255_v28, %v5298_v0 }
  0x3f   : > { %v361_v37 = vmul.f32 %v5391_v33, %v5304_v2  ;;  %v364_v39 = vmul.f32 %v5391_v33, %v5301_v1  ;;  %v433_v40 = vrot.slane %v356_v32, 1  ;;  %v360_v41 = vmul.f32 %v356_v32, %v5301_v1  ;;  %4624 = vmatprep.subr.mxu0 %v5431_v12 }
  0x40   : > { %v319_v42 = vsel %vm311_vm6, %v318_v35, %v297_v34  ;;  %v363_v43 = vmul.f32 %v356_v32, %v5304_v2  ;;  %v5450_v23 = vsub.f32 %v625_v8, %v5431_v12  ;;  %v5453_v25 = vsub.f32 %v541_v13, %v5437_v15  ;;  %4625 = vmatpush3.msra.mxu0 %v5431_v12 }
  0x41   : > { %544 = vxpose.xlu0.b32.cont [2/3] (short) %v319_v42, 128  ;;  %v462_v45 = vsel %vm311_vm6, %v461_v36, %v433_v40  ;;  %v362_v46 = vsub.f32 %v360_v41, %v361_v37  ;;  %v5458_v29 = vand.u32 4294901760, %v540_v21  ;;  %4626 = vmatprep.subr.mxu0 %v5437_v15 }
  0x42   : > { %1749 = vxpose.xlu1.b32.start [1/5] (short) %v462_v45, 128  ;;  %v365_v47 = vadd.f32 %v364_v39, %v363_v43  ;;  %v5463_v31 = vand.u32 4294901760, %v5450_v23  ;;  %v5466_v32 = vand.u32 4294901760, %v5453_v25  ;;  %4627 = vmatpush3.msra.mxu0 %v5437_v15 }
  0x43   : > { %v366_v48 = vmul.f32 %v362_v46, %v5301_v1  ;;  %v369_v49 = vmul.f32 %v362_v46, %v5304_v2  ;;  %4628 = vmatprep.subr.mxu0 %v5458_v29  ;;  %v5486_v45 = vsub.f32 %v540_v21, %v5458_v29  ;;  %v471_v21 = vrot.slane %v5315_v11, 6 }
  0x44   : > { %v367_v50 = vmul.f32 %v365_v47, %v5304_v2  ;;  %v370_v52 = vmul.f32 %v365_v47, %v5301_v1  ;;  %v489_v28 = vrot.slane %v365_v47, 7  ;;  %v885_v40 = vsub.f32 %v5450_v23, %v5463_v31  ;;  %4629 = vmatpush3.msra.mxu0 %v5458_v29 }
  0x45   : > { %545 = vxpose.xlu0.b32.end [3/3] (short) %v256_v44, 128  ;;  %v892_v41 = vsub.f32 %v5453_v25, %v5466_v32  ;;  %4684 = vmatprep.subr.mxu0 %v5450_v23 }
  0x46   : > { %v368_v53 = vsub.f32 %v366_v48, %v367_v50  ;;  %v5408_v54 = vadd.f32 %v370_v52, %v369_v49  ;;  %v516_v44 = vsel %vm299_vm0, %v5391_v33, %v489_v28  ;;  %v886_v48 = vand.u32 4294901760, %v885_v40 }
  0x47   : > { %v893_v49 = vand.u32 4294901760, %v892_v41  ;;  %v474_v28 = vrot.slane %v5327_v24, 5  ;;  %v486_v24 = vrot.slane %v5378_v18, 1  ;;  %v5231_v18 = vmov 0  }
  0x48   : > { %v375_v55 = vmul.f32 %v368_v53, %v5304_v2  ;;  %v376_v0 = vmul.f32 %v5408_v54, %v5301_v1  ;;  %v372_v56 = vmul.f32 %v368_v53, %v5301_v1  ;;  %v373_v57 = vmul.f32 %v5408_v54, %v5304_v2  ;;  %4654 = vmatprep.subr.mxu1 %v886_v48 }
  0x49   : > { %v436_v58 = vrot.slane %v368_v53, 7  ;;  %v492_v47 = vrot.slane %v5408_v54, 6  ;;  %4655 = vmatpush3.msra.mxu1 %v886_v48  ;;  %v527_v48 = vld [vmem:[%s7029_s3] sm:$0x1f] }
  0x4a   : > { %v374_v59 = vsub.f32 %v372_v56, %v373_v57  ;;  %v5416_v60 = vadd.f32 %v376_v0, %v375_v55  ;;  %v5498_v0 = vand.u32 4294901760, %v5486_v45  ;;  %4656 = vmatprep.subr.mxu1 %v893_v49 }
  0x4b   : > { %v463_v61 = vsel %vm299_vm0, %v362_v46, %v436_v58  ;;  %4657 = vmatpush3.msra.mxu1 %v893_v49 }
  0x4c   : > { %v378_v63 = vmul.f32 %v374_v59, %v5301_v1  ;;  %v379_v4 = vmul.f32 %v5416_v60, %v5304_v2  ;;  %v381_v5 = vmul.f32 %v374_v59, %v5304_v2  ;;  %v382_v6 = vmul.f32 %v5416_v60, %v5301_v1 }
  0x4d   : > { %v439_v7 = vrot.slane %v374_v59, 6  ;;  %v495_v58 = vrot.slane %v5416_v60, 5  ;;  %v517_v59 = vsel %vm301_vm1, %v516_v44, %v492_v47 }
  0x4e   : > { %v380_v9 = vsub.f32 %v378_v63, %v379_v4  ;;  %v5429_v10 = vadd.f32 %v382_v6, %v381_v5 }
  0x4f   : > { %v464_v14 = vsel %vm301_vm1, %v463_v61, %v439_v7  ;;  %v899_v61 = vsub.f32 %v5486_v45, %v5498_v0 }
  0x50   : > { %v384_v16 = vmul.f32 %v380_v9, %v5301_v1  ;;  %v385_v17 = vmul.f32 %v5429_v10, %v5304_v2  ;;  %v387_v19 = vmul.f32 %v380_v9, %v5304_v2  ;;  %v388_v20 = vmul.f32 %v5429_v10, %v5301_v1 }
  0x51   : > { %v442_v22 = vrot.slane %v380_v9, 5  ;;  %v900_v7 = vand.u32 4294901760, %v899_v61  ;;  %v498_v13 = vrot.slane %v5429_v10, 4 }
  0x52   : > { %v386_v26 = vsub.f32 %v384_v16, %v385_v17  ;;  %v5456_v27 = vadd.f32 %v388_v20, %v387_v19 }
  0x53   : > { %v465_v30 = vsel %vm303_vm2, %v464_v14, %v442_v22  ;;  %v518_v14 = vsel %vm303_vm2, %v517_v59, %v495_v58  ;;  %4658 = vmatprep.subr.mxu1 %v900_v7 }
  0x54   : > { %v390_v34 = vmul.f32 %v386_v26, %v5301_v1  ;;  %v391_v35 = vmul.f32 %v5456_v27, %v5304_v2  ;;  %v393_v36 = vmul.f32 %v386_v26, %v5304_v2  ;;  %v394_v37 = vmul.f32 %v5456_v27, %v5301_v1  ;;  %4659 = vmatpush3.msra.mxu1 %v900_v7 }
  0x55   : > { %v445_v39 = vrot.slane %v386_v26, 4  ;;  %4714 = vmatprep.subr.mxu1 %v5431_v12 }
  0x56   : > { %v392_v42 = vsub.f32 %v390_v34, %v391_v35  ;;  %v5481_v43 = vadd.f32 %v394_v37, %v393_v36  ;;  %v477_v34 = vrot.slane %v5340_v38, 4  ;;  %v519_v35 = vsel %vm305_vm3, %v518_v14, %v498_v13 }
  0x57   : > { %v466_v46 = vsel %vm305_vm3, %v465_v30, %v445_v39  ;;  %v501_v30 = vrot.slane %v5456_v27, 3  ;;  %v480_v36 = vrot.slane %v5353_v51, 3 }
  0x58   : > { %v396_v50 = vmul.f32 %v392_v42, %v5301_v1  ;;  %v397_v52 = vmul.f32 %v5481_v43, %v5304_v2  ;;  %v399_v53 = vmul.f32 %v392_v42, %v5304_v2  ;;  %v400_v33 = vmul.f32 %v5481_v43, %v5301_v1 }
  0x59   : > { %v448_v55 = vrot.slane %v392_v42, 3  ;;  %v504_v39 = vrot.slane %v5481_v43, 2  ;;  %v520_v40 = vsel %vm307_vm4, %v519_v35, %v501_v30 }
  0x5a   : > { %v398_v56 = vsub.f32 %v396_v50, %v397_v52  ;;  %v401_v57 = vadd.f32 %v400_v33, %v399_v53 }
  0x5b   : > { %v467_v54 = vsel %vm307_vm4, %v466_v46, %v448_v55  ;;  %v521_v44 = vsel %vm309_vm5, %v520_v40, %v504_v39 }
  0x5c   : > { %v402_v62 = vmul.f32 %v398_v56, %v5301_v1  ;;  %v403_v63 = vmul.f32 %v401_v57, %v5304_v2  ;;  %v405_v4 = vmul.f32 %v398_v56, %v5304_v2  ;;  %v406_v5 = vmul.f32 %v401_v57, %v5301_v1 }
  0x5d   : > { %v451_v6 = vrot.slane %v398_v56, 2  ;;  %v507_v42 = vrot.slane %v401_v57, 1 }
  0x5e   : > { %v404_v8 = vsub.f32 %v402_v62, %v403_v63  ;;  %v407_v9 = vadd.f32 %v406_v5, %v405_v4 }
  0x5f   : > { %v468_v60 = vsel %vm309_vm5, %v467_v54, %v451_v6  ;;  %v522_v43 = vsel %vm311_vm6, %v521_v44, %v507_v42 }
  0x60   : > { %v454_v16 = vrot.slane %v404_v8, 1  ;;  %v408_v17 = vmul.f32 %v404_v8, %v5301_v1  ;;  %v409_v19 = vmul.f32 %v407_v9, %v5304_v2  ;;  %v411_v20 = vmul.f32 %v404_v8, %v5304_v2 }
  0x61   : > { %v412_v22 = vmul.f32 %v407_v9, %v5301_v1  ;;  %v483_v1 = vrot.slane %v5365_v3, 2 }
  0x62   : > { %v469_v26 = vsel %vm311_vm6, %v468_v60, %v454_v16  ;;  %v410_v10 = vsub.f32 %v408_v17, %v409_v19 }
  0x63   : > { %1750 = vxpose.xlu1.b32.cont [2/5] (short) %v469_v26, 128  ;;  %v413_v2 = vadd.f32 %v412_v22, %v411_v20 }
  0x64   : > { %v509_v11 = vsel %vm299_vm0, %v410_v10, 0.0 }
  0x65   : > { %v510_v37 = vsel %vm301_vm1, %v509_v11, %v471_v21  ;;  %v524_v46 = vrot.slane %v413_v2, 7 }
  0x66   : > { %v511_v27 = vsel %vm303_vm2, %v510_v37, %v474_v28 }
  0x67   : > { %v512_v38 = vsel %vm305_vm3, %v511_v27, %v477_v34  ;;  %v526_v47 = vsel %vm299_vm0, %v407_v9, %v524_v46 }
  0x68   : > { %v513_v41 = vsel %vm307_vm4, %v512_v38, %v480_v36 }
  0x69   : > { %v514_v51 = vsel %vm309_vm5, %v513_v41, %v483_v1 }
  0x6a   : > { %v515_v3 = vsel %vm311_vm6, %v514_v51, %v486_v24 }
  0x6b   : > { %1751 = vxpose.xlu1.b32.cont [3/5] (short) %v515_v3, 128 }
  0x6e   : > { %5187 = vset.pattern.permute.xlu0 %v5231_v18 }
  0x6f   : > { %1752 = vxpose.xlu1.b32.cont [4/5] (short) %v522_v43, 128 }
  0x73   : > { %1753 = vxpose.xlu1.b32.end [5/5] (short) %v526_v47, 128 }
  0xa2   : > { %530 = vperm.xlu0 %5187, %v527_v48  }
  0xb9   : > { %v559_v49 = vpop.trf.xlu0 }
  0xba   : > { %v577_v50 = vsel %vm575_vm7, %v559_v49, 0 }
  0xbb   : > { %v5542_v52 = vand.u32 4294901760, %v577_v50 }
  0xbd   : > { %v5545_v53 = vsub.f32 %v577_v50, %v5542_v52  ;;  %v560_v33 = vpop.trf.xlu0  ;;  %4660 = vmatprep.mubr.f32.mxu1 %v5542_v52 }
  0xbe   : > { %v580_v55 = vsel %vm575_vm7, %v560_v33, 0 }
  0xbf   : > { %v5549_v56 = vand.u32 4294901760, %v580_v55  ;;  %v697_v57 = vand.u32 4294901760, %v5545_v53 }
  0xc1   : > { %v5553_v54 = vsub.f32 %v580_v55, %v5549_v56  ;;  %v561_v58 = vpop.trf.xlu0  ;;  %4661 = vmatmul.mubr.f32.vlgmr.msra.gmra.mxu1 %v5549_v56  ;;  %v698_v59 = vsub.f32 %v5545_v53, %v697_v57 }
  0xc2   : > { %v583_v61 = vsel %vm575_vm7, %v561_v58, 0  ;;  %4715 = vmatpush3.msra.mxu1 %v5431_v12 }
  0xc3   : > { %v707_v62 = vand.u32 4294901760, %v5553_v54  ;;  %v5562_v63 = vand.u32 4294901760, %v583_v61  ;;  %v699_v4 = vand.u32 4294901760, %v698_v59  ;;  %4716 = vmatprep.subr.mxu1 %v5437_v15 }
  0xc4   : > { %4717 = vmatpush3.msra.mxu1 %v5437_v15 }
  0xc5   : > { %v5567_v5 = vsub.f32 %v583_v61, %v5562_v63  ;;  %v562_v6 = vpop.trf.xlu0  ;;  %4663 = vmatprep.mubr.f32.mxu1 %v5562_v63  ;;  %4630 = vmatprep.mubr.f32.mxu0 %v699_v4  ;;  %v708_v7 = vsub.f32 %v5553_v54, %v707_v62 }
  0xc6   : > { %v586_v8 = vsel %vm575_vm7, %v562_v6, 0  ;;  %4718 = vmatprep.subr.mxu1 %v5458_v29 }
  0xc7   : > { %v717_v9 = vand.u32 4294901760, %v5567_v5  ;;  %v5576_v60 = vand.u32 4294901760, %v586_v8  ;;  %v709_v13 = vand.u32 4294901760, %v708_v7  ;;  %4719 = vmatpush3.msra.mxu1 %v5458_v29 }
  0xc8   : > { %4774 = vmatprep.subr.mxu1 %v5431_v12 }
  0xc9   : > { %v5581_v14 = vsub.f32 %v586_v8, %v5576_v60  ;;  %v563_v16 = vpop.trf.xlu0  ;;  %4664 = vmatmul.mubr.f32.gmra.mxu1 %v5576_v60  ;;  %4631 = vmatmul.mubr.f32.vlgmr.msra.gmra.mxu0 %v709_v13  ;;  %v718_v17 = vsub.f32 %v5567_v5, %v717_v9 }
  0xca   : > { %v589_v19 = vsel %vm575_vm7, %v563_v16, 0  ;;  %4685 = vmatpush3.msra.mxu0 %v5450_v23 }
  0xcb   : > { %v727_v20 = vand.u32 4294901760, %v5581_v14  ;;  %v5590_v21 = vand.u32 4294901760, %v589_v19  ;;  %v719_v22 = vand.u32 4294901760, %v718_v17  ;;  %4686 = vmatprep.subr.mxu0 %v5453_v25 }
  0xcc   : > { %4687 = vmatpush3.msra.mxu0 %v5453_v25 }
  0xcd   : > { %v5595_v26 = vsub.f32 %v589_v19, %v5590_v21  ;;  %v564_v10 = vpop.trf.xlu0  ;;  %4666 = vmatprep.mubr.f32.mxu1 %v5590_v21  ;;  %4633 = vmatprep.mubr.f32.mxu0 %v719_v22  ;;  %v728_v23 = vsub.f32 %v5581_v14, %v727_v20 }
  0xce   : > { %v592_v28 = vsel %vm575_vm7, %v564_v10, 0  ;;  %4688 = vmatprep.subr.mxu0 %v5486_v45 }
  0xcf   : > { %v737_v30 = vand.u32 4294901760, %v5595_v26  ;;  %v5604_v34 = vand.u32 4294901760, %v592_v28  ;;  %v729_v25 = vand.u32 4294901760, %v728_v23  ;;  %4689 = vmatpush3.msra.mxu0 %v5486_v45 }
  0xd0   : > { %4744 = vmatprep.subr.mxu0 %v5463_v31 }
  0xd1   : > { %v5609_v35 = vsub.f32 %v592_v28, %v5604_v34  ;;  %v565_v2 = vpop.trf.xlu0  ;;  %4667 = vmatmul.mubr.f32.gmra.mxu1 %v5604_v34  ;;  %4634 = vmatmul.mubr.f32.gmra.mxu0 %v729_v25  ;;  %v738_v36 = vsub.f32 %v5595_v26, %v737_v30 }
  0xd2   : > { %v595_v11 = vsel %vm575_vm7, %v565_v2, 0 }
  0xd3   : > { %v747_v1 = vand.u32 4294901760, %v5609_v35  ;;  %v5617_v37 = vand.u32 4294901760, %v595_v11  ;;  %v739_v45 = vand.u32 4294901760, %v738_v36 }
  0xd5   : > { %v5620_v39 = vsub.f32 %v595_v11, %v5617_v37  ;;  %v566_v24 = vpop.trf.xlu0  ;;  %4669 = vmatprep.mubr.f32.mxu1 %v5617_v37  ;;  %4636 = vmatprep.mubr.f32.mxu0 %v739_v45  ;;  %v748_v27 = vsub.f32 %v5609_v35, %v747_v1 }
  0xd6   : > { %v598_v40 = vsel %vm575_vm7, %v566_v24, 0 }
  0xd7   : > { %v757_v38 = vand.u32 4294901760, %v5620_v39  ;;  %v5628_v41 = vand.u32 4294901760, %v598_v40  ;;  %v749_v42 = vand.u32 4294901760, %v748_v27 }
  0xd9   : > { %v5631_v51 = vsub.f32 %v598_v40, %v5628_v41  ;;  %v567_v44 = vpop.trf.xlu0  ;;  %4670 = vmatmul.mubr.f32.gmra.mxu1 %v5628_v41  ;;  %4637 = vmatmul.mubr.f32.gmra.mxu0 %v749_v42  ;;  %v758_v3 = vsub.f32 %v5620_v39, %v757_v38 }
  0xda   : > { %v601_v43 = vsel %vm575_vm7, %v567_v44, 0 }
  0xdb   : > { %v767_v46 = vand.u32 4294901760, %v5631_v51  ;;  %v5639_v18 = vand.u32 4294901760, %v601_v43  ;;  %v759_v47 = vand.u32 4294901760, %v758_v3 }
  0xdd   : > { %v5642_v48 = vsub.f32 %v601_v43, %v5639_v18  ;;  %v568_v49 = vpop.trf.xlu0  ;;  %4672 = vmatprep.mubr.f32.mxu1 %v5639_v18  ;;  %4639 = vmatprep.mubr.f32.mxu0 %v759_v47  ;;  %v768_v50 = vsub.f32 %v5631_v51, %v767_v46  ;;  %v1748_v47 = vld [vmem:[#allocation2 + $0x20] sm:$0x3] }
  0xde   : > { %v604_v33 = vsel %vm575_vm7, %v568_v49, 0 }
  0xdf   : > { %v777_v55 = vand.u32 4294901760, %v5642_v48  ;;  %v5650_v58 = vand.u32 4294901760, %v604_v33  ;;  %v769_v59 = vand.u32 4294901760, %v768_v50  ;;  %v5692_v43 = vpop.trf.xlu1 }
  0xe1   : > { %v5653_v61 = vsub.f32 %v604_v33, %v5650_v58  ;;  %v569_v4 = vpop.trf.xlu0  ;;  %4673 = vmatmul.mubr.f32.gmra.mxu1 %v5650_v58  ;;  %4640 = vmatmul.mubr.f32.gmra.mxu0 %v769_v59  ;;  %v778_v6 = vsub.f32 %v5642_v48, %v777_v55 }
  0xe2   : > { %v607_v7 = vsel %vm575_vm7, %v569_v4, 0  ;;  %v1831_v4 = vsel %vm301_vm1, %v1748_v47, 0 }
  0xe3   : > { %v787_v8 = vand.u32 4294901760, %v5653_v61  ;;  %v5661_v13 = vand.u32 4294901760, %v607_v7  ;;  %v779_v16 = vand.u32 4294901760, %v778_v6 }
  0xe5   : > { %v5664_v17 = vsub.f32 %v607_v7, %v5661_v13  ;;  %v570_v19 = vpop.trf.xlu0  ;;  %4675 = vmatprep.mubr.f32.mxu1 %v5661_v13  ;;  %4642 = vmatprep.mubr.f32.mxu0 %v779_v16  ;;  %v788_v22 = vsub.f32 %v5653_v61, %v787_v8 }
  0xe6   : > { %v610_v10 = vsel %vm575_vm7, %v570_v19, 0 }
  0xe7   : > { %v797_v23 = vand.u32 4294901760, %v5664_v17  ;;  %v5672_v28 = vand.u32 4294901760, %v610_v10  ;;  %v789_v25 = vand.u32 4294901760, %v788_v22 }
  0xe9   : > { %v5675_v2 = vsub.f32 %v610_v10, %v5672_v28  ;;  %v571_v36 = vpop.trf.xlu0  ;;  %4676 = vmatmul.mubr.f32.gmra.mxu1 %v5672_v28  ;;  %4643 = vmatmul.mubr.f32.gmra.mxu0 %v789_v25  ;;  %v798_v11 = vsub.f32 %v5664_v17, %v797_v23 }
  0xea   : > { %v613_v45 = vsel %vm575_vm7, %v571_v36, 0  ;;  %v5710_v36 = vpop.trf.xlu1 }
  0xeb   : > { %v807_v24 = vand.u32 4294901760, %v5675_v2  ;;  %v5683_v27 = vand.u32 4294901760, %v613_v45  ;;  %v799_v40 = vand.u32 4294901760, %v798_v11  ;;  %v5712_v11 = vand.u32 4294901760, %v1831_v4 }
  0xed   : > { %v5686_v42 = vsub.f32 %v613_v45, %v5683_v27  ;;  %v572_v44 = vpop.trf.xlu0  ;;  %4678 = vmatprep.mubr.f32.mxu1 %v5683_v27  ;;  %4645 = vmatprep.mubr.f32.mxu0 %v799_v40  ;;  %v808_v3 = vsub.f32 %v5675_v2, %v807_v24 }
  0xee   : > { %v616_v49 = vsel %vm575_vm7, %v572_v44, 0 }
  0xef   : > { %v817_v50 = vand.u32 4294901760, %v5686_v42  ;;  %v5696_v33 = vand.u32 4294901760, %v616_v49  ;;  %v809_v59 = vand.u32 4294901760, %v808_v3 }
  0xf1   : > { %v5700_v6 = vsub.f32 %v616_v49, %v5696_v33  ;;  %v573_v7 = vpop.trf.xlu0  ;;  %4679 = vmatmul.mubr.f32.gmra.mxu1 %v5696_v33  ;;  %4646 = vmatmul.mubr.f32.gmra.mxu0 %v809_v59  ;;  %v818_v16 = vsub.f32 %v5686_v42, %v817_v50 }
  0xf2   : > { %v619_v19 = vsel %vm575_vm7, %v573_v7, 0  ;;  %v5726_v7 = vsub.f32 %v1831_v4, %v5712_v11 }
  0xf3   : > { %v827_v22 = vand.u32 4294901760, %v5700_v6  ;;  %v5708_v10 = vand.u32 4294901760, %v619_v19  ;;  %v819_v25 = vand.u32 4294901760, %v818_v16 }
  0xf4   : > { %v5741_v4 = vand.u32 4294901760, %v5726_v7 }
  0xf5   : > { %v5715_v45 = vsub.f32 %v619_v19, %v5708_v10  ;;  %v574_v40 = vpop.trf.xlu0  ;;  %4681 = vmatprep.mubr.f32.mxu1 %v5708_v10  ;;  %4648 = vmatprep.mubr.f32.mxu0 %v819_v25  ;;  %v828_v44 = vsub.f32 %v5700_v6, %v827_v22  ;;  %v5735_v25 = vpop.trf.xlu1 }
  0xf6   : > { %v622_v3 = vsel %vm575_vm7, %v574_v40, 0 }
  0xf7   : > { %v837_v47 = vand.u32 4294901760, %v5715_v45  ;;  %v5723_v49 = vand.u32 4294901760, %v622_v3  ;;  %v829_v59 = vand.u32 4294901760, %v828_v44 }
  0xf9   : > { %v5729_v16 = vsub.f32 %v622_v3, %v5723_v49  ;;  %4682 = vmatmul.mubr.f32.gmra.mxu1 %v5723_v49  ;;  %4649 = vmatmul.mubr.f32.gmra.mxu0 %v829_v59  ;;  %v838_v19 = vsub.f32 %v5715_v45, %v837_v47  ;;  %v5752_v59 = vpop.trf.xlu1 }
  0xfa   : > { %4720 = vmatprep.mubr.f32.mxu1 %v697_v57 }
  0xfb   : > { %v847_v40 = vand.u32 4294901760, %v5729_v16  ;;  %v839_v44 = vand.u32 4294901760, %v838_v19  ;;  %v2089_v19 = vsub.f32 %v5726_v7, %v5741_v4 }
  0xfd   : > { %4721 = vmatmul.mubr.f32.vlgmr.msra.gmra.mxu1 %v707_v62  ;;  %4651 = vmatprep.mubr.f32.mxu0 %v839_v44  ;;  %v848_v3 = vsub.f32 %v5729_v16, %v847_v40 }
  0xfe   : > { %4723 = vmatprep.mubr.f32.mxu1 %v717_v9  ;;  %4775 = vmatpush3.msra.mxu1 %v5431_v12  ;;  %v2090_v12 = vand.u32 4294901760, %v2089_v19  ;;  %v1745_v9 = vld [vmem:[#allocation2 + $0x8] sm:$0xff] }
  0xff   : > { %v849_v57 = vand.u32 4294901760, %v848_v3  ;;  %4776 = vmatprep.subr.mxu1 %v5437_v15 }
 0x100   : > { %4777 = vmatpush3.msra.mxu1 %v5437_v15  ;;  %v5767_v15 = vpop.trf.xlu1 }
 0x101   : > { %4652 = vmatmul.mubr.f32.gmra.mxu0 %v849_v57  ;;  %4724 = vmatmul.mubr.f32.gmra.mxu1 %v727_v20  ;;  %v5813_v20 = vand.u32 4294901760, %v1745_v9 }
 0x102   : > { %4690 = vmatprep.mubr.f32.mxu0 %v5545_v53  ;;  %4726 = vmatprep.mubr.f32.mxu1 %v737_v30 }
 0x103   : > { %4778 = vmatprep.subr.mxu1 %v5458_v29 }
 0x104   : > { %4779 = vmatpush3.msra.mxu1 %v5458_v29  ;;  %v1747_v29 = vld [vmem:[#allocation2 + $0x18] sm:$0xff]  ;;  %v5781_v53 = vpop.trf.xlu1 }
 0x105   : > { %4691 = vmatmul.mubr.f32.vlgmr.msra.gmra.mxu0 %v5553_v54  ;;  %4727 = vmatmul.mubr.f32.gmra.mxu1 %v747_v1  ;;  %v1746_v54 = vld [vmem:[#allocation2 + $0x10] sm:$0xff]  ;;  %v1798_v3 = vsel %vm1781_vm8, %v5781_v53, 0 }
 0x106   : > { %4693 = vmatprep.mubr.f32.mxu0 %v5567_v5  ;;  %4729 = vmatprep.mubr.f32.mxu1 %v757_v38  ;;  %v5796_v62 = vand.u32 4294901760, %v1746_v54 }
 0x107   : > { %4745 = vmatpush3.msra.mxu0 %v5463_v31  ;;  %4838 = vmatprep.subr.mxu1 %v2090_v12  ;;  %v5784_v31 = vand.u32 4294901760, %v1747_v29 }
 0x108   : > { %4746 = vmatprep.subr.mxu0 %v5466_v32  ;;  %v5802_v5 = vpop.trf.xlu1 }
 0x109   : > { %4694 = vmatmul.mubr.f32.gmra.mxu0 %v5581_v14  ;;  %4730 = vmatmul.mubr.f32.gmra.mxu1 %v767_v46  ;;  %v5811_v14 = vsub.f32 %v1746_v54, %v5796_v62 }
 0x10a   : > { %4696 = vmatprep.mubr.f32.mxu0 %v5595_v26  ;;  %4732 = vmatprep.mubr.f32.mxu1 %v777_v55  ;;  %v1744_v26 = vld [vmem:[#allocation2] sm:$0xff] }
 0x10b   : > { %4747 = vmatpush3.msra.mxu0 %v5466_v32  ;;  %v5794_v32 = vsub.f32 %v1747_v29, %v5784_v31  ;;  %v5826_v1 = vand.u32 4294901760, %v5811_v14  ;;  %v5831_v38 = vand.u32 4294901760, %v1744_v26 }
 0x10c   : > { %4748 = vmatprep.subr.mxu0 %v5498_v0  ;;  %v5821_v30 = vpop.trf.xlu1 }
 0x10d   : > { %4697 = vmatmul.mubr.f32.gmra.mxu0 %v5609_v35  ;;  %4733 = vmatmul.mubr.f32.gmra.mxu1 %v787_v8  ;;  %v1804_v54 = vsel %vm1781_vm8, %v5821_v30, 0 }
 0x10e   : > { %4699 = vmatprep.mubr.f32.mxu0 %v5620_v39  ;;  %4735 = vmatprep.mubr.f32.mxu1 %v797_v23  ;;  %v5829_v39 = vsub.f32 %v1745_v9, %v5813_v20 }
 0x10f   : > { %4749 = vmatpush3.msra.mxu0 %v5498_v0  ;;  %v5808_v0 = vand.u32 4294901760, %v5794_v32 }
 0x110   : > { %4804 = vmatprep.subr.mxu0 %v5712_v11  ;;  %v5842_v55 = vand.u32 4294901760, %v5829_v39 }
 0x111   : > { %4700 = vmatmul.mubr.f32.gmra.mxu0 %v5631_v51  ;;  %4736 = vmatmul.mubr.f32.gmra.mxu1 %v807_v24  ;;  %v2096_v35 = vsub.f32 %v5794_v32, %v5808_v0  ;;  %v4279_v51 = vld [vmem:[%s5295_s7 + $0x3] ss:$0 sm:$0xff] }
 0x112   : > { %4702 = vmatprep.mubr.f32.mxu0 %v5642_v48  ;;  %4738 = vmatprep.mubr.f32.mxu1 %v817_v50  ;;  %v2103_v48 = vsub.f32 %v5811_v14, %v5826_v1 }
 0x113   : > { %v2097_v46 = vand.u32 4294901760, %v2096_v35 }
 0x114   : > { %v2104_v24 = vand.u32 4294901760, %v2103_v48 }
 0x115   : > { %4703 = vmatmul.mubr.f32.gmra.mxu0 %v5653_v61  ;;  %4739 = vmatmul.mubr.f32.gmra.mxu1 %v827_v22  ;;  %v5845_v61 = vsub.f32 %v1744_v26, %v5831_v38 }
 0x116   : > { %4705 = vmatprep.mubr.f32.mxu0 %v5664_v17  ;;  %4741 = vmatprep.mubr.f32.mxu1 %v837_v47  ;;  %v5849_v17 = vpop.trf.xlu1 }
 0x117   : > { %v5856_v50 = vand.u32 4294901760, %v5845_v61  ;;  %v1807_v9 = vsel %vm1781_vm8, %v5849_v17, 0 }
 0x118   : > { %v5970_v48 = vand.u32 4294901760, %v1807_v9 }
 0x119   : > { %4706 = vmatmul.mubr.f32.gmra.mxu0 %v5675_v2  ;;  %4742 = vmatmul.mubr.f32.gmra.mxu1 %v847_v40  ;;  %v1795_v40 = vsel %vm1781_vm8, %v5767_v15, 0  ;;  %v5934_v15 = vand.u32 4294901760, %v1798_v3 }
 0x11a   : > { %4708 = vmatprep.mubr.f32.mxu0 %v5686_v42  ;;  %4780 = vmatprep.mubr.f32.mxu1 %v5542_v52  ;;  %v2110_v42 = vsub.f32 %v5829_v39, %v5842_v55 }
 0x11c   : > { %v2111_v22 = vand.u32 4294901760, %v2110_v42 }
 0x11d   : > { %4709 = vmatmul.mubr.f32.gmra.mxu0 %v5700_v6  ;;  %4781 = vmatmul.mubr.f32.vlgmr.msra.gmra.mxu1 %v5549_v56  ;;  %v531_v8 = vpop.permute.xlu0 %530  ;;  %v5862_v6 = vpop.trf.xlu1 }
 0x11e   : > { %v537_v23 = vmul.f32 %v4279_v51, %v531_v8  ;;  %4711 = vmatprep.mubr.f32.mxu0 %v5715_v45  ;;  %4783 = vmatprep.mubr.f32.mxu1 %v5562_v63  ;;  %v2117_v45 = vsub.f32 %v5845_v61, %v5856_v50  ;;  %v5964_v51 = vand.u32 4294901760, %v1804_v54  ;;  %v1810_v17 = vsel %vm1781_vm8, %v5862_v6, 0 }
 0x11f   : > { %4839 = vmatpush3.msra.mxu1 %v2090_v12  ;;  %v5929_v12 = vand.u32 4294901760, %v1795_v40 }
 0x120   : > { %v538_v2 = vmul.f32 1.442695, %v537_v23  ;;  %4840 = vmatprep.subr.mxu1 %v2097_v46  ;;  %v5988_v6 = vsub.f32 %v1804_v54, %v5964_v51 }
 0x121   : > { %4712 = vmatmul.mubr.f32.gmra.mxu0 %v5729_v16  ;;  %4784 = vmatmul.mubr.f32.gmra.mxu1 %v5576_v60  ;;  %v5874_v47 = vpop.trf.xlu1 }
 0x122   : > { %5188 = vpow2.f32 %v538_v2  ;;  %4750 = vmatprep.mubr.f32.mxu0 %v5542_v52  ;;  %4786 = vmatprep.mubr.f32.mxu1 %v5590_v21  ;;  %v2118_v52 = vand.u32 4294901760, %v2117_v45  ;;  %v5994_v45 = vand.u32 4294901760, %v1810_v17 }
 0x123   : > { %4841 = vmatpush3.msra.mxu1 %v2097_v46 }
 0x124   : > { %4842 = vmatprep.subr.mxu1 %v2104_v24 }
 0x125   : > { %4751 = vmatmul.mubr.f32.vlgmr.msra.gmra.mxu0 %v5549_v56  ;;  %4787 = vmatmul.mubr.f32.gmra.mxu1 %v5604_v34  ;;  %v1783_v56 = vsel %vm1781_vm8, %v5692_v43, 0  ;;  %v1789_v43 = vsel %vm1781_vm8, %v5735_v25, 0  ;;  %v5893_v16 = vpop.trf.xlu1  ;;  %v1792_v25 = vsel %vm1781_vm8, %v5752_v59, 0 }
 0x126   : > { %4753 = vmatprep.mubr.f32.mxu0 %v5562_v63  ;;  %4789 = vmatprep.mubr.f32.mxu1 %v5617_v37  ;;  %v5884_v63 = vand.u32 4294901760, %v1783_v56  ;;  %v5917_v44 = vand.u32 4294901760, %v1792_v25 }
 0x127   : > { %4843 = vmatpush3.msra.mxu1 %v2104_v24  ;;  %4805 = vmatpush3.msra.mxu0 %v5712_v11  ;;  %v1813_v24 = vsel %vm1781_vm8, %v5874_v47, 0 }
 0x128   : > { %4844 = vmatprep.subr.mxu1 %v2111_v22  ;;  %4806 = vmatprep.subr.mxu0 %v5784_v31  ;;  %v5941_v53 = vsub.f32 %v1792_v25, %v5917_v44  ;;  %v1975_v25 = vand.u32 4294901760, %v5988_v6 }
 0x129   : > { %4754 = vmatmul.mubr.f32.gmra.mxu0 %v5576_v60  ;;  %4790 = vmatmul.mubr.f32.gmra.mxu1 %v5628_v41  ;;  %v1786_v60 = vsel %vm1781_vm8, %v5710_v36, 0  ;;  %v5903_v36 = vand.u32 4294901760, %v1789_v43  ;;  %v1777_v57 = vpop.trf.xlu1 }
 0x12a   : > { %4756 = vmatprep.mubr.f32.mxu0 %v5590_v21  ;;  %4792 = vmatprep.mubr.f32.mxu1 %v5639_v18 }
 0x12b   : > { %4845 = vmatpush3.msra.mxu1 %v2111_v22  ;;  %4807 = vmatpush3.msra.mxu0 %v5784_v31  ;;  %v5927_v19 = vsub.f32 %v1789_v43, %v5903_v36  ;;  %v5992_v22 = vsub.f32 %v1807_v9, %v5970_v48  ;;  %v1819_v43 = vsel %vm1781_vm8, %v1777_v57, 0 }
 0x12c   : > { %4846 = vmatprep.subr.mxu1 %v2118_v52  ;;  %4808 = vmatprep.subr.mxu0 %v5796_v62 }
 0x12d   : > { %4757 = vmatmul.mubr.f32.gmra.mxu0 %v5604_v34  ;;  %4793 = vmatmul.mubr.f32.gmra.mxu1 %v5650_v58  ;;  %v5896_v34 = vand.u32 4294901760, %v1786_v60  ;;  %v1778_v30 = vpop.trf.xlu1 }
 0x12e   : > { %4759 = vmatprep.mubr.f32.mxu0 %v5617_v37  ;;  %4795 = vmatprep.mubr.f32.mxu1 %v5661_v13  ;;  %v5901_v37 = vsub.f32 %v1783_v56, %v5884_v63  ;;  %v6001_v56 = vand.u32 4294901760, %v1813_v24 }
 0x12f   : > { %v5189_v21 = vpop.eup %5188  ;;  %4847 = vmatpush3.msra.mxu1 %v2118_v52  ;;  %4809 = vmatpush3.msra.mxu0 %v5796_v62 }
 0x130   : > { %2977 = vxpose.xlu1.b32.start.end [1/1] (short) %v5189_v21, 128  ;;  %4810 = vmatprep.subr.mxu0 %v5813_v20  ;;  %v1905_v59 = vand.u32 4294901760, %v5901_v37  ;;  %v6027_v9 = vsub.f32 %v1813_v24, %v6001_v56  ;;  %v1976_v24 = vsub.f32 %v5988_v6, %v1975_v25 }
 0x131   : > { %4760 = vmatmul.mubr.f32.gmra.mxu0 %v5628_v41  ;;  %4796 = vmatmul.mubr.f32.gmra.mxu1 %v5672_v28  ;;  %v5915_v41 = vsub.f32 %v1786_v60, %v5896_v34  ;;  %v1779_v47 = vpop.trf.xlu1  ;;  %v1816_v60 = vsel %vm1781_vm8, %v5893_v16, 0  ;;  %v7032_v16 = vand.u32 4294901760, %v5992_v22 }
 0x132   : > { %4762 = vmatprep.mubr.f32.mxu0 %v5639_v18  ;;  %4798 = vmatprep.mubr.f32.mxu1 %v5683_v27  ;;  %v1801_v18 = vsel %vm1781_vm8, %v5802_v5, 0  ;;  %v5949_v5 = vsub.f32 %v1795_v40, %v5929_v12  ;;  %v1906_v26 = vsub.f32 %v5901_v37, %v1905_v59  ;;  %v6024_v57 = vand.u32 4294901760, %v1816_v60 }
 0x133   : > { %4811 = vmatpush3.msra.mxu0 %v5813_v20  ;;  %4906 = vmatprep.subr.mxu1 %v5712_v11  ;;  %v5936_v29 = vand.u32 4294901760, %v1801_v18 }
 0x134   : > { %4812 = vmatprep.subr.mxu0 %v5831_v38  ;;  %v1945_v8 = vand.u32 4294901760, %v5949_v5  ;;  %v1907_v23 = vand.u32 4294901760, %v1906_v26  ;;  %v6030_v26 = vand.u32 4294901760, %v1819_v43 }
 0x135   : > { %4763 = vmatmul.mubr.f32.gmra.mxu0 %v5650_v58  ;;  %4799 = vmatmul.mubr.f32.gmra.mxu1 %v5696_v33  ;;  %v1915_v58 = vand.u32 4294901760, %v5915_v41  ;;  %v5962_v35 = vsub.f32 %v1801_v18, %v5936_v29  ;;  %v6021_v18 = vsub.f32 %v1810_v17, %v5994_v45  ;;  %v1825_v17 = vsel %vm1781_vm8, %v1779_v47, 0 }
 0x136   : > { %4765 = vmatprep.mubr.f32.mxu0 %v5661_v13  ;;  %4801 = vmatprep.mubr.f32.mxu1 %v5708_v10  ;;  %v1925_v13 = vand.u32 4294901760, %v5927_v19 }
 0x137   : > { %4813 = vmatpush3.msra.mxu0 %v5831_v38  ;;  %v1916_v46 = vsub.f32 %v5915_v41, %v1915_v58  ;;  %v1965_v42 = vand.u32 4294901760, %v5962_v35 }
 0x138   : > { %4872 = vmatprep.subr.mxu0 %v5726_v7  ;;  %v1926_v2 = vsub.f32 %v5927_v19, %v1925_v13 }
 0x139   : > { %4766 = vmatmul.mubr.f32.gmra.mxu0 %v5672_v28  ;;  %4802 = vmatmul.mubr.f32.gmra.mxu1 %v5723_v49  ;;  %v5959_v28 = vsub.f32 %v1798_v3, %v5934_v15  ;;  %v1966_v3 = vsub.f32 %v5962_v35, %v1965_v42 }
 0x13a   : > { %4768 = vmatprep.mubr.f32.mxu0 %v5683_v27  ;;  %4848 = vmatprep.mubr.f32.mxu1 %v5884_v63  ;;  %v1935_v27 = vand.u32 4294901760, %v5941_v53  ;;  %v1927_v21 = vand.u32 4294901760, %v1926_v2  ;;  %v1780_v2 = vpop.trf.xlu1 }
 0x13c   : > { %v1936_v52 = vsub.f32 %v5941_v53, %v1935_v27 }
 0x13d   : > { %4769 = vmatmul.mubr.f32.gmra.mxu0 %v5696_v33  ;;  %4849 = vmatmul.mubr.f32.vlgmr.msra.gmra.mxu1 %v5896_v34  ;;  %v1955_v33 = vand.u32 4294901760, %v5959_v28 }
 0x13e   : > { %4771 = vmatprep.mubr.f32.mxu0 %v5708_v10  ;;  %4851 = vmatprep.mubr.f32.mxu1 %v5903_v36  ;;  %v1917_v10 = vand.u32 4294901760, %v1916_v46  ;;  %v1937_v54 = vand.u32 4294901760, %v1936_v52  ;;  %v1967_v52 = vand.u32 4294901760, %v1966_v3  ;;  %v6056_v3 = vand.u32 4294901760, %v1825_v17 }
 0x13f   : > { %4907 = vmatpush3.msra.mxu1 %v5712_v11  ;;  %v1956_v40 = vsub.f32 %v5959_v28, %v1955_v33 }
 0x140   : > { %4908 = vmatprep.subr.mxu1 %v5784_v31 }
 0x141   : > { %4772 = vmatmul.mubr.f32.gmra.mxu0 %v5723_v49  ;;  %4852 = vmatmul.mubr.f32.gmra.mxu1 %v5917_v44  ;;  %v1946_v49 = vsub.f32 %v5949_v5, %v1945_v8 }
 0x142   : > { %4814 = vmatprep.mubr.f32.mxu0 %v1907_v23  ;;  %4854 = vmatprep.mubr.f32.mxu1 %v5929_v12  ;;  %v1822_v23 = vsel %vm1781_vm8, %v1778_v30, 0  ;;  %v6043_v30 = vsub.f32 %v1816_v60, %v6024_v57  ;;  %v1828_v60 = vsel %vm1781_vm8, %v1780_v2, 0 }
 0x143   : > { %4909 = vmatpush3.msra.mxu1 %v5784_v31  ;;  %v1947_v46 = vand.u32 4294901760, %v1946_v49  ;;  %v6046_v47 = vand.u32 4294901760, %v1822_v23  ;;  %v7033_v49 = vand.u32 4294901760, %v6027_v9  ;;  %v6071_v2 = vand.u32 4294901760, %v1828_v60 }
 0x144   : > { %4910 = vmatprep.subr.mxu1 %v5796_v62 }
 0x145   : > { %4815 = vmatmul.mubr.f32.vlgmr.msra.gmra.mxu0 %v1917_v10  ;;  %4855 = vmatmul.mubr.f32.gmra.mxu1 %v5934_v15  ;;  %v1957_v10 = vand.u32 4294901760, %v1956_v40  ;;  %v6053_v40 = vsub.f32 %v1819_v43, %v6030_v26  ;;  %v6066_v43 = vsub.f32 %v1822_v23, %v6046_v47  ;;  %v2006_v23 = vsub.f32 %v6027_v9, %v7033_v49 }
 0x146   : > { %4817 = vmatprep.mubr.f32.mxu0 %v1927_v21  ;;  %4857 = vmatprep.mubr.f32.mxu1 %v5936_v29  ;;  %v7034_v21 = vand.u32 4294901760, %v6021_v18 }
 0x147   : > { %4911 = vmatpush3.msra.mxu1 %v5796_v62  ;;  %4873 = vmatpush3.msra.mxu0 %v5726_v7  ;;  %v1986_v7 = vsub.f32 %v5992_v22, %v7032_v16  ;;  %v2015_v16 = vand.u32 4294901760, %v6043_v30 }
 0x148   : > { %4912 = vmatprep.subr.mxu1 %v5813_v20  ;;  %4874 = vmatprep.subr.mxu0 %v5794_v32 }
 0x149   : > { %4818 = vmatmul.mubr.f32.gmra.mxu0 %v1937_v54  ;;  %4858 = vmatmul.mubr.f32.gmra.mxu1 %v5964_v51  ;;  %v1977_v54 = vand.u32 4294901760, %v1976_v24  ;;  %v6076_v24 = vsub.f32 %v1825_v17, %v6056_v3  ;;  %v2016_v49 = vsub.f32 %v6043_v30, %v2015_v16 }
 0x14a   : > { %4820 = vmatprep.mubr.f32.mxu0 %v1947_v46  ;;  %4860 = vmatprep.mubr.f32.mxu1 %v5970_v48  ;;  %v1996_v46 = vsub.f32 %v6021_v18, %v7034_v21 }
 0x14b   : > { %4913 = vmatpush3.msra.mxu1 %v5813_v20  ;;  %4875 = vmatpush3.msra.mxu0 %v5794_v32  ;;  %v2025_v32 = vand.u32 4294901760, %v6053_v40  ;;  %v7035_v21 = vand.u32 4294901760, %v6076_v24 }
 0x14c   : > { %4914 = vmatprep.subr.mxu1 %v5831_v38  ;;  %4876 = vmatprep.subr.mxu0 %v5811_v14  ;;  %v1997_v17 = vand.u32 4294901760, %v1996_v46  ;;  %v2017_v46 = vand.u32 4294901760, %v2016_v49 }
 0x14d   : > { %4821 = vmatmul.mubr.f32.gmra.mxu0 %v1957_v10  ;;  %4861 = vmatmul.mubr.f32.gmra.mxu1 %v5994_v45  ;;  %v1987_v10 = vand.u32 4294901760, %v1986_v7  ;;  %v6088_v7 = vsub.f32 %v1828_v60, %v6071_v2 }
 0x14e   : > { %4823 = vmatprep.mubr.f32.mxu0 %v1967_v52  ;;  %4863 = vmatprep.mubr.f32.mxu1 %v6001_v56  ;;  %v7036_v52 = vand.u32 4294901760, %v6066_v43 }
 0x14f   : > { %4915 = vmatpush3.msra.mxu1 %v5831_v38  ;;  %4877 = vmatpush3.msra.mxu0 %v5811_v14  ;;  %v2007_v14 = vand.u32 4294901760, %v2006_v23  ;;  %v2055_v60 = vand.u32 4294901760, %v6088_v7 }
 0x150   : > { %4878 = vmatprep.subr.mxu0 %v5829_v39  ;;  %4974 = vmatprep.subr.mxu1 %v5712_v11 }
 0x151   : > { %4824 = vmatmul.mubr.f32.gmra.mxu0 %v1977_v54  ;;  %4864 = vmatmul.mubr.f32.gmra.mxu1 %v6024_v57  ;;  %v2026_v54 = vsub.f32 %v6053_v40, %v2025_v32 }
 0x152   : > { %4826 = vmatprep.mubr.f32.mxu0 %v1987_v10  ;;  %4866 = vmatprep.mubr.f32.mxu1 %v6030_v26  ;;  %v2036_v10 = vsub.f32 %v6066_v43, %v7036_v52 }
 0x153   : > { %4879 = vmatpush3.msra.mxu0 %v5829_v39  ;;  %v2027_v23 = vand.u32 4294901760, %v2026_v54  ;;  %v2046_v39 = vsub.f32 %v6076_v24, %v7035_v21 }
 0x154   : > { %4880 = vmatprep.subr.mxu0 %v5845_v61  ;;  %v2037_v49 = vand.u32 4294901760, %v2036_v10 }
 0x155   : > { %4827 = vmatmul.mubr.f32.gmra.mxu0 %v1997_v17  ;;  %4867 = vmatmul.mubr.f32.gmra.mxu1 %v6046_v47  ;;  %v2976_v17 = vld [vmem:[%s7030_s4] sm:$0x1f]  ;;  %v2047_v21 = vand.u32 4294901760, %v2046_v39 }
 0x156   : > { %4829 = vmatprep.mubr.f32.mxu0 %v2007_v14  ;;  %4869 = vmatprep.mubr.f32.mxu1 %v6056_v3  ;;  %v2056_v14 = vsub.f32 %v6088_v7, %v2055_v60  ;;  %v3059_v54 = vsel %vm307_vm4, %v2976_v17, 0 }
 0x157   : > { %4881 = vmatpush3.msra.mxu0 %v5845_v61  ;;  %v6121_v52 = vand.u32 4294901760, %v3059_v54 }
 0x158   : > { %4940 = vmatprep.subr.mxu0 %v5741_v4  ;;  %v2057_v61 = vand.u32 4294901760, %v2056_v14 }
 0x159   : > { %4830 = vmatmul.mubr.f32.gmra.mxu0 %v2017_v46  ;;  %4870 = vmatmul.mubr.f32.gmra.mxu1 %v6071_v2  ;;  %v6130_v46 = vsub.f32 %v3059_v54, %v6121_v52 }
 0x15a   : > { %4916 = vmatprep.mubr.f32.mxu1 %v1905_v59  ;;  %4832 = vmatprep.mubr.f32.mxu0 %v2027_v23 }
 0x15d   : > { %4833 = vmatmul.mubr.f32.gmra.mxu0 %v2037_v49  ;;  %4917 = vmatmul.mubr.f32.vlgmr.msra.gmra.mxu1 %v1915_v58 }
 0x15e   : > { %4919 = vmatprep.mubr.f32.mxu1 %v1925_v13  ;;  %4835 = vmatprep.mubr.f32.mxu0 %v2047_v21 }
 0x15f   : > { %4975 = vmatpush3.msra.mxu1 %v5712_v11  ;;  %v6140_v11 = vand.u32 4294901760, %v6130_v46 }
 0x160   : > { %4976 = vmatprep.subr.mxu1 %v5784_v31 }
 0x161   : > { %4836 = vmatmul.mubr.f32.gmra.mxu0 %v2057_v61  ;;  %4920 = vmatmul.mubr.f32.gmra.mxu1 %v1935_v27 }
 0x162   : > { %4882 = vmatprep.mubr.f32.mxu0 %v5901_v37  ;;  %4922 = vmatprep.mubr.f32.mxu1 %v1945_v8  ;;  %v7089_v37 = vand.u32 4294901760, %v5992_v22 }
 0x163   : > { %4977 = vmatpush3.msra.mxu1 %v5784_v31  ;;  %v3321_v31 = vsub.f32 %v6130_v46, %v6140_v11 }
 0x164   : > { %4978 = vmatprep.subr.mxu1 %v5796_v62 }
 0x165   : > { %4883 = vmatmul.mubr.f32.vlgmr.msra.gmra.mxu0 %v5915_v41  ;;  %4923 = vmatmul.mubr.f32.gmra.mxu1 %v1955_v33  ;;  %v7091_v41 = vand.u32 4294901760, %v6027_v9 }
 0x166   : > { %4885 = vmatprep.mubr.f32.mxu0 %v5927_v19  ;;  %4925 = vmatprep.mubr.f32.mxu1 %v1965_v42 }
 0x167   : > { %4979 = vmatpush3.msra.mxu1 %v5796_v62  ;;  %4941 = vmatpush3.msra.mxu0 %v5741_v4  ;;  %v3322_v4 = vand.u32 4294901760, %v3321_v31  ;;  %v7090_v62 = vand.u32 4294901760, %v6021_v18 }
 0x168   : > { %4980 = vmatprep.subr.mxu1 %v5813_v20  ;;  %4942 = vmatprep.subr.mxu0 %v5808_v0 }
 0x169   : > { %4886 = vmatmul.mubr.f32.gmra.mxu0 %v5941_v53  ;;  %4926 = vmatmul.mubr.f32.gmra.mxu1 %v1975_v25 }
 0x16a   : > { %4888 = vmatprep.mubr.f32.mxu0 %v5949_v5  ;;  %4928 = vmatprep.mubr.f32.mxu1 %v7089_v37 }
 0x16b   : > { %4981 = vmatpush3.msra.mxu1 %v5813_v20  ;;  %4943 = vmatpush3.msra.mxu0 %v5808_v0  ;;  %v7092_v0 = vand.u32 4294901760, %v6066_v43  ;;  %v7093_v20 = vand.u32 4294901760, %v6076_v24 }
 0x16c   : > { %4982 = vmatprep.subr.mxu1 %v5831_v38  ;;  %4944 = vmatprep.subr.mxu0 %v5826_v1 }
 0x16d   : > { %4889 = vmatmul.mubr.f32.gmra.mxu0 %v5959_v28  ;;  %4929 = vmatmul.mubr.f32.gmra.mxu1 %v7090_v62 }
 0x16e   : > { %4891 = vmatprep.mubr.f32.mxu0 %v5962_v35  ;;  %4931 = vmatprep.mubr.f32.mxu1 %v7091_v41 }
 0x16f   : > { %4983 = vmatpush3.msra.mxu1 %v5831_v38  ;;  %4945 = vmatpush3.msra.mxu0 %v5826_v1 }
 0x170   : > { %4946 = vmatprep.subr.mxu0 %v5842_v55  ;;  %5034 = vmatprep.subr.mxu1 %v3322_v4 }
 0x171   : > { %4892 = vmatmul.mubr.f32.gmra.mxu0 %v5988_v6  ;;  %4932 = vmatmul.mubr.f32.gmra.mxu1 %v2015_v16 }
 0x172   : > { %4894 = vmatprep.mubr.f32.mxu0 %v5992_v22  ;;  %4934 = vmatprep.mubr.f32.mxu1 %v2025_v32 }
 0x173   : > { %4947 = vmatpush3.msra.mxu0 %v5842_v55 }
 0x174   : > { %4948 = vmatprep.subr.mxu0 %v5856_v50 }
 0x175   : > { %4895 = vmatmul.mubr.f32.gmra.mxu0 %v6021_v18  ;;  %4935 = vmatmul.mubr.f32.gmra.mxu1 %v7092_v0 }
 0x176   : > { %4897 = vmatprep.mubr.f32.mxu0 %v6027_v9  ;;  %4937 = vmatprep.mubr.f32.mxu1 %v7093_v20 }
 0x177   : > { %4949 = vmatpush3.msra.mxu0 %v5856_v50 }
 0x178   : > { %5008 = vmatprep.subr.mxu0 %v6121_v52 }
 0x179   : > { %4898 = vmatmul.mubr.f32.gmra.mxu0 %v6043_v30  ;;  %4938 = vmatmul.mubr.f32.gmra.mxu1 %v2055_v60 }
 0x17a   : > { %4984 = vmatprep.mubr.f32.mxu1 %v5884_v63  ;;  %4900 = vmatprep.mubr.f32.mxu0 %v6053_v40 }
 0x17d   : > { %4901 = vmatmul.mubr.f32.gmra.mxu0 %v6066_v43  ;;  %4985 = vmatmul.mubr.f32.vlgmr.msra.gmra.mxu1 %v5896_v34 }
 0x17e   : > { %4987 = vmatprep.mubr.f32.mxu1 %v5903_v36  ;;  %4903 = vmatprep.mubr.f32.mxu0 %v6076_v24 }
 0x17f   : > { %5035 = vmatpush3.msra.mxu1 %v3322_v4 }
 0x180   : > { %5086 = vmatprep.subr.mxu1 %v6121_v52 }
 0x181   : > { %4904 = vmatmul.mubr.f32.gmra.mxu0 %v6088_v7  ;;  %4988 = vmatmul.mubr.f32.gmra.mxu1 %v5917_v44  ;;  %v4662_v1 = vpop.f32.mrf.mxu1 }
 0x182   : > { %4950 = vmatprep.mubr.f32.mxu0 %v5884_v63  ;;  %4990 = vmatprep.mubr.f32.mxu1 %v5929_v12 }
 0x183   : > { %v6205_v38 = vpop.f32.mrf.mxu1 }
 0x185   : > { %4951 = vmatmul.mubr.f32.vlgmr.msra.gmra.mxu0 %v5896_v34  ;;  %4991 = vmatmul.mubr.f32.gmra.mxu1 %v5934_v15 }
 0x186   : > { %4953 = vmatprep.mubr.f32.mxu0 %v5903_v36  ;;  %4993 = vmatprep.mubr.f32.mxu1 %v5936_v29 }
 0x187   : > { %5009 = vmatpush3.msra.mxu0 %v6121_v52 }
 0x188   : > { %5060 = vmatprep.subr.mxu0 %v6130_v46 }
 0x189   : > { %4954 = vmatmul.mubr.f32.gmra.mxu0 %v5917_v44  ;;  %4994 = vmatmul.mubr.f32.gmra.mxu1 %v5964_v51  ;;  %v4665_v55 = vpop.f32.mrf.mxu1  ;;  %v4632_v50 = vpop.f32.mrf.mxu0 }
 0x18a   : > { %4956 = vmatprep.mubr.f32.mxu0 %v5929_v12  ;;  %4996 = vmatprep.mubr.f32.mxu1 %v5970_v48  ;;  %v6215_v63 = vadd.f32 %v4662_v1, %v4632_v50 }
 0x18b   : > { %v6219_v34 = vpop.f32.mrf.mxu1  ;;  %v6223_v36 = vpop.f32.mrf.mxu0 }
 0x18d   : > { %4957 = vmatmul.mubr.f32.gmra.mxu0 %v5934_v15  ;;  %4997 = vmatmul.mubr.f32.gmra.mxu1 %v5994_v45 }
 0x18e   : > { %4959 = vmatprep.mubr.f32.mxu0 %v5936_v29  ;;  %4999 = vmatprep.mubr.f32.mxu1 %v6001_v56 }
 0x191   : > { %4960 = vmatmul.mubr.f32.gmra.mxu0 %v5964_v51  ;;  %5000 = vmatmul.mubr.f32.gmra.mxu1 %v6024_v57  ;;  %v4668_v44 = vpop.f32.mrf.mxu1  ;;  %v4635_v59 = vpop.f32.mrf.mxu0 }
 0x192   : > { %4962 = vmatprep.mubr.f32.mxu0 %v5970_v48  ;;  %5002 = vmatprep.mubr.f32.mxu1 %v6030_v26  ;;  %v6229_v19 = vadd.f32 %v4665_v55, %v4635_v59 }
 0x193   : > { %v6233_v12 = vpop.f32.mrf.mxu1  ;;  %v6235_v15 = vpop.f32.mrf.mxu0 }
 0x195   : > { %4963 = vmatmul.mubr.f32.gmra.mxu0 %v5994_v45  ;;  %5003 = vmatmul.mubr.f32.gmra.mxu1 %v6046_v47 }
 0x196   : > { %4965 = vmatprep.mubr.f32.mxu0 %v6001_v56  ;;  %5005 = vmatprep.mubr.f32.mxu1 %v6056_v3 }
 0x199   : > { %4966 = vmatmul.mubr.f32.gmra.mxu0 %v6024_v57  ;;  %5006 = vmatmul.mubr.f32.gmra.mxu1 %v6071_v2  ;;  %v4671_v29 = vpop.f32.mrf.mxu1  ;;  %v4638_v58 = vpop.f32.mrf.mxu0 }
 0x19a   : > { %4968 = vmatprep.mubr.f32.mxu0 %v6030_v26  ;;  %v6242_v53 = vadd.f32 %v4668_v44, %v4638_v58 }
 0x19b   : > { %v6245_v13 = vpop.f32.mrf.mxu1  ;;  %v6247_v5 = vpop.f32.mrf.mxu0 }
 0x19d   : > { %4969 = vmatmul.mubr.f32.gmra.mxu0 %v6046_v47 }
 0x19e   : > { %4971 = vmatprep.mubr.f32.mxu0 %v6056_v3 }
 0x1a1   : > { %4972 = vmatmul.mubr.f32.gmra.mxu0 %v6071_v2  ;;  %v4674_v28 = vpop.f32.mrf.mxu1  ;;  %v4641_v35 = vpop.f32.mrf.mxu0 }
 0x1a2   : > { %v6251_v51 = vadd.f32 %v4671_v29, %v4641_v35 }
 0x1a3   : > { %v6253_v27 = vpop.f32.mrf.mxu1  ;;  %v6255_v48 = vpop.f32.mrf.mxu0 }
 0x1a9   : > { %v4677_v8 = vpop.f32.mrf.mxu1  ;;  %v4644_v33 = vpop.f32.mrf.mxu0 }
 0x1aa   : > { %v6257_v42 = vadd.f32 %v4674_v28, %v4644_v33 }
 0x1ab   : > { %v6260_v45 = vpop.f32.mrf.mxu1  ;;  %v6262_v56 = vpop.f32.mrf.mxu0 }
 0x1ac   : > { %v2993_v6 = vpop.trf.xlu1 }
 0x1ad   : > { %v3011_v22 = vsel %vm3009_vm9, %v2993_v6, 0 }
 0x1ae   : > { %v6264_v25 = vand.u32 4294901760, %v3011_v22 }
 0x1b0   : > { %7094 = vst [vmem:[#allocation5_spill] sm:$0xff] %v6264_v25  ;;  %v6267_v16 = vsub.f32 %v3011_v22, %v6264_v25  ;;  %5036 = vmatprep.mubr.f32.mxu1 %v6264_v25  ;;  %v2994_v18 = vpop.trf.xlu1 }
 0x1b1   : > { %v3014_v57 = vsel %vm3009_vm9, %v2994_v18, 0  ;;  %v4680_v9 = vpop.f32.mrf.mxu1  ;;  %v4647_v26 = vpop.f32.mrf.mxu0 }
 0x1b2   : > { %v7042_v21 = vand.u32 4294901760, %v6267_v16  ;;  %v6272_v30 = vand.u32 4294901760, %v3014_v57  ;;  %v6274_v47 = vadd.f32 %v4677_v8, %v4647_v26 }
 0x1b3   : > { %v6284_v32 = vpop.f32.mrf.mxu1  ;;  %v6286_v24 = vpop.f32.mrf.mxu0 }
 0x1b4   : > { %7095 = vst [vmem:[#allocation6_spill] sm:$0xff] %v6272_v30  ;;  %v6277_v40 = vsub.f32 %v3014_v57, %v6272_v30  ;;  %5037 = vmatmul.mubr.f32.vlgmr.msra.gmra.mxu1 %v6272_v30  ;;  %v2995_v3 = vpop.trf.xlu1  ;;  %v3130_v43 = vsub.f32 %v6267_v16, %v7042_v21 }
 0x1b5   : > { %v3017_v2 = vsel %vm3009_vm9, %v2995_v3, 0  ;;  %5087 = vmatpush3.msra.mxu1 %v6121_v52 }
 0x1b6   : > { %v7041_v7 = vand.u32 4294901760, %v6277_v40  ;;  %v6290_v60 = vand.u32 4294901760, %v3017_v2  ;;  %v3131_v10 = vand.u32 4294901760, %v3130_v43  ;;  %5138 = vmatprep.subr.mxu1 %v6121_v52 }
 0x1b8   : > { %7096 = vst [vmem:[#allocation7_spill] sm:$0xff] %v6290_v60  ;;  %v3140_v23 = vsub.f32 %v6277_v40, %v7041_v7  ;;  %v6297_v39 = vsub.f32 %v3017_v2, %v6290_v60  ;;  %5010 = vmatprep.mubr.f32.mxu0 %v3131_v10  ;;  %5039 = vmatprep.mubr.f32.mxu1 %v6290_v60  ;;  %v2996_v17 = vpop.trf.xlu1 }
 0x1b9   : > { %v3020_v49 = vsel %vm3009_vm9, %v2996_v17, 0  ;;  %v4683_v14 = vpop.f32.mrf.mxu1  ;;  %v4650_v54 = vpop.f32.mrf.mxu0 }
 0x1ba   : > { %v3141_v61 = vand.u32 4294901760, %v3140_v23  ;;  %v7040_v31 = vand.u32 4294901760, %v6297_v39  ;;  %v6302_v37 = vand.u32 4294901760, %v3020_v49  ;;  %v6304_v4 = vadd.f32 %v4680_v9, %v4650_v54 }
 0x1bb   : > { %v6306_v62 = vpop.f32.mrf.mxu1  ;;  %v6316_v50 = vpop.f32.mrf.mxu0 }
 0x1bc   : > { %7097 = vst [vmem:[#allocation8_spill] sm:$0xff] %v6302_v37  ;;  %7098 = vst [vmem:[#allocation9_spill] sm:$0xff] %v6306_v62  ;;  %v6309_v41 = vsub.f32 %v3020_v49, %v6302_v37  ;;  %5011 = vmatmul.mubr.f32.vlgmr.msra.gmra.mxu0 %v3141_v61  ;;  %5040 = vmatmul.mubr.f32.gmra.mxu1 %v6302_v37  ;;  %v2997_v0 = vpop.trf.xlu1  ;;  %v3150_v20 = vsub.f32 %v6297_v39, %v7040_v31 }
 0x1bd   : > { %v3023_v1 = vsel %vm3009_vm9, %v2997_v0, 0  ;;  %v4722_v55 = vpop.f32.mrf.mxu1  ;;  %5061 = vmatpush3.msra.mxu0 %v6130_v46 }
 0x1be   : > { %v7038_v44 = vand.u32 4294901760, %v6309_v41  ;;  %v6320_v59 = vand.u32 4294901760, %v3023_v1  ;;  %v3151_v29 = vand.u32 4294901760, %v3150_v20  ;;  %5112 = vmatprep.subr.mxu0 %v6140_v11 }
 0x1bf   : > { %v6323_v58 = vpop.f32.mrf.mxu1 }
 0x1c0   : > { %7099 = vst [vmem:[#allocation10_spill] sm:$0xff] %v6320_v59  ;;  %v6326_v28 = vsub.f32 %v3023_v1, %v6320_v59  ;;  %5013 = vmatprep.mubr.f32.mxu0 %v3151_v29  ;;  %5042 = vmatprep.mubr.f32.mxu1 %v6320_v59  ;;  %v2998_v35 = vpop.trf.xlu1  ;;  %v3160_v46 = vsub.f32 %v6309_v41, %v7038_v44 }
 0x1c1   : > { %v3026_v8 = vsel %vm3009_vm9, %v2998_v35, 0  ;;  %v4653_v33 = vpop.f32.mrf.mxu0  ;;  %v4725_v6 = vpop.f32.mrf.mxu1 }
 0x1c2   : > { %v7037_v22 = vand.u32 4294901760, %v6326_v28  ;;  %v6334_v18 = vand.u32 4294901760, %v3026_v8  ;;  %v6336_v57 = vadd.f32 %v4683_v14, %v4653_v33  ;;  %v3161_v9 = vand.u32 4294901760, %v3160_v46 }
 0x1c3   : > { %v6338_v26 = vpop.f32.mrf.mxu0  ;;  %v6340_v3 = vpop.f32.mrf.mxu1 }
 0x1c4   : > { %7100 = vst [vmem:[#allocation11_spill] sm:$0xff] %v6334_v18  ;;  %v6343_v43 = vsub.f32 %v3026_v8, %v6334_v18  ;;  %5014 = vmatmul.mubr.f32.gmra.mxu0 %v3161_v9  ;;  %5043 = vmatmul.mubr.f32.gmra.mxu1 %v6334_v18  ;;  %v2999_v2 = vpop.trf.xlu1  ;;  %v3170_v10 = vsub.f32 %v6326_v28, %v7037_v22 }
 0x1c5   : > { %v3029_v23 = vsel %vm3009_vm9, %v2999_v2, 0  ;;  %v4692_v17 = vpop.f32.mrf.mxu0  ;;  %v4728_v49 = vpop.f32.mrf.mxu1 }
 0x1c6   : > { %v7039_v14 = vand.u32 4294901760, %v6343_v43  ;;  %v6351_v54 = vand.u32 4294901760, %v3029_v23  ;;  %v1113_v61 = vadd.f32 %v4692_v17, %v6215_v63  ;;  %v3171_v0 = vand.u32 4294901760, %v3170_v10 }
 0x1c7   : > { %v6354_v20 = vpop.f32.mrf.mxu0  ;;  %v6356_v1 = vpop.f32.mrf.mxu1 }
 0x1c8   : > { %7101 = vst [vmem:[#allocation12_spill] sm:$0xff] %v6351_v54  ;;  %v6359_v29 = vsub.f32 %v3029_v23, %v6351_v54  ;;  %5016 = vmatprep.mubr.f32.mxu0 %v3171_v0  ;;  %5045 = vmatprep.mubr.f32.mxu1 %v6351_v54  ;;  %v3000_v35 = vpop.trf.xlu1  ;;  %v3180_v46 = vsub.f32 %v6343_v43, %v7039_v14 }
 0x1c9   : > { %v3032_v8 = vsel %vm3009_vm9, %v3000_v35, 0  ;;  %v4695_v33 = vpop.f32.mrf.mxu0  ;;  %v4731_v63 = vpop.f32.mrf.mxu1  ;;  %v6366_v9 = vadd.f32 %v4722_v55, %v1113_v61 }
 0x1ca   : > { %v7045_v2 = vand.u32 4294901760, %v6359_v29  ;;  %v6369_v10 = vand.u32 4294901760, %v3032_v8  ;;  %v1127_v23 = vadd.f32 %v4695_v33, %v6229_v19  ;;  %v3181_v17 = vand.u32 4294901760, %v3180_v46 }
 0x1cb   : > { %v6372_v0 = vpop.f32.mrf.mxu0  ;;  %v6374_v22 = vpop.f32.mrf.mxu1 }
 0x1cc   : > { %7102 = vst [vmem:[#allocation13_spill] sm:$0xff] %v6369_v10  ;;  %v6377_v44 = vsub.f32 %v3032_v8, %v6369_v10  ;;  %5017 = vmatmul.mubr.f32.gmra.mxu0 %v3181_v17  ;;  %5046 = vmatmul.mubr.f32.gmra.mxu1 %v6369_v10  ;;  %v3001_v35 = vpop.trf.xlu1  ;;  %v3190_v55 = vsub.f32 %v6359_v29, %v7045_v2 }
 0x1cd   : > { %v3035_v61 = vsel %vm3009_vm9, %v3001_v35, 0  ;;  %v4698_v14 = vpop.f32.mrf.mxu0  ;;  %v4734_v19 = vpop.f32.mrf.mxu1  ;;  %v6384_v46 = vadd.f32 %v4725_v6, %v1127_v23 }
 0x1ce   : > { %7103 = vst [vmem:[#allocation14_spill] sm:$0xff] %v6377_v44  ;;  %v7054_v33 = vand.u32 4294901760, %v6377_v44  ;;  %v6387_v31 = vand.u32 4294901760, %v3035_v61  ;;  %v1141_v8 = vadd.f32 %v4698_v14, %v6242_v53  ;;  %v3191_v17 = vand.u32 4294901760, %v3190_v55 }
 0x1cf   : > { %v6390_v7 = vpop.f32.mrf.mxu0  ;;  %v6392_v21 = vpop.f32.mrf.mxu1 }
 0x1d0   : > { %7104 = vst [vmem:[#allocation15_spill] sm:$0xff] %v6387_v31  ;;  %v6395_v10 = vsub.f32 %v3035_v61, %v6387_v31  ;;  %5019 = vmatprep.mubr.f32.mxu0 %v3191_v17  ;;  %5048 = vmatprep.mubr.f32.mxu1 %v6387_v31  ;;  %v3002_v35 = vpop.trf.xlu1  ;;  %v3200_v6 = vsub.f32 %v6377_v44, %v7054_v33 }
 0x1d1   : > { %v3038_v23 = vsel %vm3009_vm9, %v3002_v35, 0  ;;  %v4701_v2 = vpop.f32.mrf.mxu0  ;;  %v4737_v53 = vpop.f32.mrf.mxu1  ;;  %v6402_v14 = vadd.f32 %v4728_v49, %v1141_v8 }
 0x1d2   : > { %7105 = vst [vmem:[#allocation16_spill] sm:$0xff] %v6395_v10  ;;  %v7063_v55 = vand.u32 4294901760, %v6395_v10  ;;  %v6405_v54 = vand.u32 4294901760, %v3038_v23  ;;  %v1155_v61 = vadd.f32 %v4701_v2, %v6251_v51  ;;  %v3201_v17 = vand.u32 4294901760, %v3200_v6 }
 0x1d3   : > { %v6408_v18 = vpop.f32.mrf.mxu0  ;;  %v6410_v31 = vpop.f32.mrf.mxu1 }
 0x1d4   : > { %7106 = vst [vmem:[#allocation17_spill] sm:$0xff] %v6405_v54  ;;  %v6413_v59 = vsub.f32 %v3038_v23, %v6405_v54  ;;  %5020 = vmatmul.mubr.f32.gmra.mxu0 %v3201_v17  ;;  %5049 = vmatmul.mubr.f32.gmra.mxu1 %v6405_v54  ;;  %v3003_v35 = vpop.trf.xlu1  ;;  %v3210_v49 = vsub.f32 %v6395_v10, %v7063_v55 }
 0x1d5   : > { %v3041_v8 = vsel %vm3009_vm9, %v3003_v35, 0  ;;  %v4704_v33 = vpop.f32.mrf.mxu0  ;;  %v4740_v51 = vpop.f32.mrf.mxu1  ;;  %v6420_v2 = vadd.f32 %v4731_v63, %v1155_v61 }
 0x1d6   : > { %7107 = vst [vmem:[#allocation18_spill] sm:$0xff] %v6413_v59  ;;  %v7070_v6 = vand.u32 4294901760, %v6413_v59  ;;  %v6423_v37 = vand.u32 4294901760, %v3041_v8  ;;  %v1169_v23 = vadd.f32 %v4704_v33, %v6257_v42  ;;  %v3211_v17 = vand.u32 4294901760, %v3210_v49 }
 0x1d7   : > { %v6426_v60 = vpop.f32.mrf.mxu0  ;;  %v6428_v54 = vpop.f32.mrf.mxu1 }
 0x1d8   : > { %7108 = vst [vmem:[#allocation19_spill] sm:$0xff] %v6423_v37  ;;  %7109 = vst [vmem:[#allocation20_spill] sm:$0xff] %v6428_v54  ;;  %v6431_v30 = vsub.f32 %v3041_v8, %v6423_v37  ;;  %5022 = vmatprep.mubr.f32.mxu0 %v3211_v17  ;;  %5051 = vmatprep.mubr.f32.mxu1 %v6423_v37  ;;  %v3004_v35 = vpop.trf.xlu1  ;;  %v3220_v63 = vsub.f32 %v6413_v59, %v7070_v6 }
 0x1d9   : > { %v3044_v61 = vsel %vm3009_vm9, %v3004_v35, 0  ;;  %v4707_v55 = vpop.f32.mrf.mxu0  ;;  %v4743_v42 = vpop.f32.mrf.mxu1  ;;  %v6438_v33 = vadd.f32 %v4734_v19, %v1169_v23 }
 0x1da   : > { %7110 = vst [vmem:[#allocation21_spill] sm:$0xff] %v6431_v30  ;;  %v7077_v49 = vand.u32 4294901760, %v6431_v30  ;;  %v6441_v25 = vand.u32 4294901760, %v3044_v61  ;;  %v1183_v8 = vadd.f32 %v4707_v55, %v6274_v47  ;;  %v3221_v17 = vand.u32 4294901760, %v3220_v63 }
 0x1db   : > { %v6444_v54 = vpop.f32.mrf.mxu0  ;;  %v6446_v37 = vpop.f32.mrf.mxu1 }
 0x1dc   : > { %7111 = vst [vmem:[#allocation22_spill] sm:$0xff] %v6441_v25  ;;  %7112 = vst [vmem:[#allocation23_spill] sm:$0xff] %v6446_v37  ;;  %v6449_v10 = vsub.f32 %v3044_v61, %v6441_v25  ;;  %5023 = vmatmul.mubr.f32.gmra.mxu0 %v3221_v17  ;;  %5052 = vmatmul.mubr.f32.gmra.mxu1 %v6441_v25  ;;  %v3005_v35 = vpop.trf.xlu1  ;;  %v3230_v19 = vsub.f32 %v6431_v30, %v7077_v49 }
 0x1dd   : > { %v3047_v23 = vsel %vm3009_vm9, %v3005_v35, 0  ;;  %v4710_v6 = vpop.f32.mrf.mxu0  ;;  %v4782_v47 = vpop.f32.mrf.mxu1  ;;  %v6456_v55 = vadd.f32 %v4737_v53, %v1183_v8  ;;  %v938_v25 = vadd.f32 %v6205_v38, %v6223_v36  ;;  %v950_v30 = vadd.f32 %v6219_v34, %v6235_v15 }
 0x1de   : > { %v7082_v63 = vand.u32 4294901760, %v6449_v10  ;;  %v6459_v37 = vand.u32 4294901760, %v3047_v23  ;;  %v1197_v61 = vadd.f32 %v4710_v6, %v6304_v4  ;;  %v3231_v17 = vand.u32 4294901760, %v3230_v19 }
 0x1df   : > { %v6464_v59 = vpop.f32.mrf.mxu0  ;;  %v1650_v44 = vpop.f32.mrf.mxu1  ;;  %v1106_v4 = vadd.f32 %v6354_v20, %v938_v25 }
 0x1e0   : > { %7113 = vst [vmem:[#allocation24_spill] sm:$0xff] %v6459_v37  ;;  %v6467_v49 = vsub.f32 %v3047_v23, %v6459_v37  ;;  %5025 = vmatprep.mubr.f32.mxu0 %v3231_v17  ;;  %5054 = vmatprep.mubr.f32.mxu1 %v6459_v37  ;;  %v3006_v53 = vpop.trf.xlu1  ;;  %v3240_v8 = vsub.f32 %v6449_v10, %v7082_v63 }
 0x1e1   : > { %v3050_v6 = vsel %vm3009_vm9, %v3006_v53, 0  ;;  %v4713_v35 = vpop.f32.mrf.mxu0  ;;  %v4785_v38 = vpop.f32.mrf.mxu1  ;;  %v6475_v36 = vadd.f32 %v4740_v51, %v1197_v61  ;;  %v1287_v15 = vadd.f32 %v6323_v58, %v1106_v4 }
 0x1e2   : > { %7114 = vst [vmem:[#allocation25_spill] sm:$0xff] %v6467_v49  ;;  %v7085_v19 = vand.u32 4294901760, %v6467_v49  ;;  %v6478_v23 = vand.u32 4294901760, %v3050_v6  ;;  %v1211_v17 = vadd.f32 %v4713_v35, %v6336_v57  ;;  %v3241_v37 = vand.u32 4294901760, %v3240_v8 }
 0x1e3   : > { %v6483_v62 = vpop.f32.mrf.mxu0  ;;  %v1662_v63 = vpop.f32.mrf.mxu1  ;;  %v1120_v57 = vadd.f32 %v6372_v0, %v950_v30 }
 0x1e4   : > { %7115 = vst [vmem:[#allocation26_spill] sm:$0xff] %v6478_v23  ;;  %v6486_v25 = vsub.f32 %v3050_v6, %v6478_v23  ;;  %5026 = vmatmul.mubr.f32.gmra.mxu0 %v3241_v37  ;;  %5055 = vmatmul.mubr.f32.gmra.mxu1 %v6478_v23  ;;  %v3007_v20 = vpop.trf.xlu1  ;;  %v3250_v51 = vsub.f32 %v6467_v49, %v7085_v19 }
 0x1e5   : > { %v3053_v61 = vsel %vm3009_vm9, %v3007_v20, 0  ;;  %v4752_v53 = vpop.f32.mrf.mxu0  ;;  %v4788_v34 = vpop.f32.mrf.mxu1  ;;  %v6495_v8 = vadd.f32 %v4743_v42, %v1211_v17  ;;  %v962_v19 = vadd.f32 %v6233_v12, %v6247_v5  ;;  %v1303_v12 = vadd.f32 %v6340_v3, %v1120_v57 }
 0x1e6   : > { %v3259_v6 = vand.u32 4294901760, %v6486_v25  ;;  %v6498_v37 = vand.u32 4294901760, %v3053_v61  ;;  %v1493_v35 = vadd.f32 %v4752_v53, %v6366_v9  ;;  %v3251_v23 = vand.u32 4294901760, %v3250_v51 }
 0x1e7   : > { %v1486_v49 = vpop.f32.mrf.mxu0  ;;  %v1674_v30 = vpop.f32.mrf.mxu1  ;;  %v1134_v4 = vadd.f32 %v6390_v7, %v962_v19  ;;  %v974_v7 = vadd.f32 %v6245_v13, %v6255_v48  ;;  %v7116_v48 = vand.u32 4294901760, %v6267_v16 }
 0x1e8   : > { %v6504_v0 = vsub.f32 %v3053_v61, %v6498_v37  ;;  %v6506_v20 = vadd.f32 %v4782_v47, %v1493_v35  ;;  %v1487_v58 = vadd.f32 %v1486_v49, %v1287_v15  ;;  %5028 = vmatprep.mubr.f32.mxu0 %v3251_v23  ;;  %5057 = vmatprep.mubr.f32.mxu1 %v6498_v37  ;;  %v3008_v42 = vpop.trf.xlu1 }
 0x1e9   : > { %v3056_v9 = vsel %vm3009_vm9, %v3008_v42, 0  ;;  %v4755_v17 = vpop.f32.mrf.mxu0  ;;  %v4791_v51 = vpop.f32.mrf.mxu1  ;;  %v3260_v5 = vsub.f32 %v6486_v25, %v3259_v6  ;;  %v1319_v42 = vadd.f32 %v6356_v1, %v1134_v4 }
 0x1ea   : > { %v3269_v47 = vand.u32 4294901760, %v6504_v0  ;;  %v6516_v61 = vadd.f32 %v1650_v44, %v1487_v58  ;;  %v6518_v49 = vand.u32 4294901760, %v3056_v9  ;;  %v1505_v23 = vadd.f32 %v4755_v17, %v6384_v46 }
 0x1eb   : > { %v1498_v19 = vpop.f32.mrf.mxu0  ;;  %v1686_v53 = vpop.f32.mrf.mxu1  ;;  %v3261_v15 = vand.u32 4294901760, %v3260_v5  ;;  %v1148_v46 = vadd.f32 %v6408_v18, %v974_v7  ;;  %v986_v5 = vadd.f32 %v6253_v27, %v6262_v56 }
 0x1ec   : > { %v6524_v3 = vsub.f32 %v3056_v9, %v6518_v49  ;;  %v6526_v57 = vadd.f32 %v4785_v38, %v1505_v23  ;;  %v1499_v35 = vadd.f32 %v1498_v19, %v1303_v12  ;;  %5058 = vmatmul.mubr.f32.gmra.mxu1 %v6518_v49  ;;  %v3270_v44 = vsub.f32 %v6504_v0, %v3269_v47 }
 0x1ed   : > { %5029 = vmatmul.mubr.f32.gmra.mxu0 %v3261_v15  ;;  %v4758_v58 = vpop.f32.mrf.mxu0  ;;  %v4794_v13 = vpop.f32.mrf.mxu1  ;;  %5088 = vmatprep.mubr.f32.mxu1 %v7116_v48  ;;  %v7117_v15 = vand.u32 4294901760, %v6277_v40  ;;  %v1335_v27 = vadd.f32 %v6374_v22, %v1148_v46  ;;  %v1162_v56 = vadd.f32 %v6426_v60, %v986_v5  ;;  %v7119_v22 = vand.u32 4294901760, %v6309_v41 }
 0x1ee   : > { %v3279_v38 = vand.u32 4294901760, %v6524_v3  ;;  %v6537_v9 = vadd.f32 %v1662_v63, %v1499_v35  ;;  %v1517_v17 = vadd.f32 %v4758_v58, %v6402_v14  ;;  %v3271_v12 = vand.u32 4294901760, %v3270_v44 }
 0x1ef   : > { %v1510_v23 = vpop.f32.mrf.mxu0  ;;  %v1698_v18 = vpop.f32.mrf.mxu1  ;;  %v7118_v14 = vand.u32 4294901760, %v6297_v39  ;;  %v7120_v60 = vand.u32 4294901760, %v6326_v28 }
 0x1f0   : > { %v6542_v7 = vadd.f32 %v4788_v34, %v1517_v17  ;;  %v1511_v19 = vadd.f32 %v1510_v23, %v1319_v42  ;;  %5031 = vmatprep.mubr.f32.mxu0 %v3271_v12  ;;  %5089 = vmatmul.mubr.f32.vlgmr.msra.gmra.mxu1 %v7117_v15  ;;  %v3280_v1 = vsub.f32 %v6524_v3, %v3279_v38 }
 0x1f1   : > { %v4761_v63 = vpop.f32.mrf.mxu0  ;;  %v4797_v4 = vpop.f32.mrf.mxu1  ;;  %5091 = vmatprep.mubr.f32.mxu1 %v7118_v14  ;;  %5139 = vmatpush3.msra.mxu1 %v6121_v52  ;;  %v998_v42 = vadd.f32 %v6260_v45, %v6286_v24  ;;  %v1351_v24 = vadd.f32 %v6392_v21, %v1162_v56  ;;  %v1010_v23 = vadd.f32 %v6284_v32, %v6316_v50  ;;  %v7122_v50 = vand.u32 4294901760, %v6359_v29  ;;  %v7126_v56 = vld [vmem:[#allocation16_spill] sm:$0xff] }
 0x1f2   : > { %v6554_v34 = vadd.f32 %v1674_v30, %v1511_v19  ;;  %v1529_v35 = vadd.f32 %v4761_v63, %v6420_v2  ;;  %v3281_v44 = vand.u32 4294901760, %v3280_v1  ;;  %v7123_v63 = vld [vmem:[#allocation9_spill] sm:$0xff] }
 0x1f3   : > { %v1522_v58 = vpop.f32.mrf.mxu0  ;;  %v1710_v48 = vpop.f32.mrf.mxu1  ;;  %v1176_v2 = vadd.f32 %v6444_v54, %v998_v42  ;;  %v1190_v21 = vadd.f32 %v6464_v59, %v1010_v23 }
 0x1f4   : > { %v6559_v17 = vadd.f32 %v4791_v51, %v1529_v35  ;;  %v1523_v12 = vadd.f32 %v1522_v58, %v1335_v27  ;;  %5032 = vmatmul.mubr.f32.gmra.mxu0 %v3281_v44  ;;  %5092 = vmatmul.mubr.f32.gmra.mxu1 %v7119_v22  ;;  %v7127_v35 = vand.u32 4294901760, %v7126_v56 }
 0x1f5   : > { %v4764_v52 = vpop.f32.mrf.mxu0  ;;  %v4800_v46 = vpop.f32.mrf.mxu1  ;;  %5062 = vmatprep.mubr.f32.mxu0 %v6267_v16  ;;  %5094 = vmatprep.mubr.f32.mxu1 %v7120_v60  ;;  %v7121_v16 = vand.u32 4294901760, %v6343_v43 }
 0x1f6   : > { %v6567_v30 = vadd.f32 %v1686_v53, %v1523_v12  ;;  %v1541_v45 = vadd.f32 %v4764_v52, %v6438_v33  ;;  %v7129_v52 = vld [vmem:[#allocation18_spill] sm:$0xff] }
 0x1f7   : > { %v1534_v51 = vpop.f32.mrf.mxu0  ;;  %v1722_v5 = vpop.f32.mrf.mxu1 }
 0x1f8   : > { %v6573_v19 = vadd.f32 %v4794_v13, %v1541_v45  ;;  %v1535_v15 = vadd.f32 %v1534_v51, %v1351_v24  ;;  %5063 = vmatmul.mubr.f32.vlgmr.msra.gmra.mxu0 %v6277_v40  ;;  %5095 = vmatmul.mubr.f32.gmra.mxu1 %v7121_v16  ;;  %v1367_v40 = vadd.f32 %v6410_v31, %v1176_v2  ;;  %v7133_v24 = vld [vmem:[#allocation23_spill] sm:$0xff]  ;;  %v7134_v16 = vand.u32 4294901760, %v6449_v10 }
 0x1f9   : > { %5113 = vmatpush3.msra.mxu0 %v6140_v11  ;;  %v4767_v54 = vpop.f32.mrf.mxu0  ;;  %v4803_v53 = vpop.f32.mrf.mxu1  ;;  %5065 = vmatprep.mubr.f32.mxu0 %v6297_v39  ;;  %v1022_v11 = vadd.f32 %v7123_v63, %v6338_v26  ;;  %v7124_v39 = vld [vmem:[#allocation14_spill] sm:$0xff] }
 0x1fa   : > { %v6581_v33 = vadd.f32 %v1698_v18, %v1535_v15  ;;  %v1553_v32 = vadd.f32 %v4767_v54, %v6456_v55  ;;  %5097 = vmatprep.mubr.f32.mxu1 %v7122_v50  ;;  %v7125_v59 = vand.u32 4294901760, %v7124_v39 }
 0x1fb   : > { %v1546_v13 = vpop.f32.mrf.mxu0  ;;  %v1734_v1 = vpop.f32.mrf.mxu1  ;;  %v1204_v31 = vadd.f32 %v6483_v62, %v1022_v11  ;;  %v7131_v62 = vld [vmem:[#allocation21_spill] sm:$0xff] }
 0x1fc   : > { %v6589_v14 = vadd.f32 %v4797_v4, %v1553_v32  ;;  %v1547_v27 = vadd.f32 %v1546_v13, %v1367_v40  ;;  %5066 = vmatmul.mubr.f32.gmra.mxu0 %v6309_v41  ;;  %5098 = vmatmul.mubr.f32.gmra.mxu1 %v7125_v59  ;;  %v7128_v4 = vld [vmem:[#allocation20_spill] sm:$0xff] }
 0x1fd   : > { %v4770_v18 = vpop.f32.mrf.mxu0  ;;  %v4850_v55 = vpop.f32.mrf.mxu1  ;;  %5068 = vmatprep.mubr.f32.mxu0 %v6326_v28  ;;  %5100 = vmatprep.mubr.f32.mxu1 %v7127_v35  ;;  %v1383_v58 = vadd.f32 %v7128_v4, %v1190_v21  ;;  %v7130_v28 = vand.u32 4294901760, %v7129_v52 }
 0x1fe   : > { %v6598_v44 = vadd.f32 %v1710_v48, %v1547_v27  ;;  %v1565_v26 = vadd.f32 %v4770_v18, %v6475_v36  ;;  %v7132_v48 = vand.u32 4294901760, %v7131_v62  ;;  %v7137_v18 = vld [vmem:[#allocation5_spill] sm:$0xff] }
 0x1ff   : > { %v1558_v42 = vpop.f32.mrf.mxu0  ;;  %v2155_v41 = vpop.f32.mrf.mxu1 }
 0x200   : > { %v6602_v12 = vadd.f32 %v4800_v46, %v1565_v26  ;;  %v1559_v22 = vadd.f32 %v1558_v42, %v1383_v58  ;;  %5069 = vmatmul.mubr.f32.gmra.mxu0 %v6343_v43  ;;  %5101 = vmatmul.mubr.f32.gmra.mxu1 %v7130_v28  ;;  %v1399_v46 = vadd.f32 %v7133_v24, %v1204_v31  ;;  %v7138_v31 = vld [vmem:[#allocation6_spill] sm:$0xff]  ;;  %v7143_v24 = vld [vmem:[#allocation12_spill] sm:$0xff] }
 0x201   : > { %v4773_v60 = vpop.f32.mrf.mxu0  ;;  %v4853_v2 = vpop.f32.mrf.mxu1  ;;  %5071 = vmatprep.mubr.f32.mxu0 %v6359_v29  ;;  %5103 = vmatprep.mubr.f32.mxu1 %v7132_v48  ;;  %v7141_v28 = vld [vmem:[#allocation10_spill] sm:$0xff]  ;;  %v7142_v48 = vld [vmem:[#allocation11_spill] sm:$0xff] }
 0x202   : > { %v6610_v36 = vadd.f32 %v1722_v5, %v1559_v22  ;;  %v1577_v45 = vadd.f32 %v4773_v60, %v6495_v8  ;;  %v7135_v5 = vld [vmem:[#allocation25_spill] sm:$0xff]  ;;  %v7140_v22 = vld [vmem:[#allocation8_spill] sm:$0xff] }
 0x203   : > { %v1570_v51 = vpop.f32.mrf.mxu0  ;;  %v2167_v23 = vpop.f32.mrf.mxu1  ;;  %v7136_v21 = vand.u32 4294901760, %v7135_v5 }
 0x204   : > { %v6614_v15 = vadd.f32 %v4803_v53, %v1577_v45  ;;  %v1571_v43 = vadd.f32 %v1570_v51, %v1399_v46  ;;  %5072 = vmatmul.mubr.f32.gmra.mxu0 %v7124_v39  ;;  %5104 = vmatmul.mubr.f32.gmra.mxu1 %v7134_v16  ;;  %v7144_v16 = vld [vmem:[#allocation13_spill] sm:$0xff] }
 0x205   : > { %v4816_v29 = vpop.f32.mrf.mxu0  ;;  %v4856_v54 = vpop.f32.mrf.mxu1  ;;  %5074 = vmatprep.mubr.f32.mxu0 %v7126_v56  ;;  %5106 = vmatprep.mubr.f32.mxu1 %v7136_v21 }
 0x206   : > { %v6622_v8 = vadd.f32 %v1734_v1, %v1571_v43  ;;  %v6624_v32 = vadd.f32 %v4850_v55, %v4816_v29 }
 0x207   : > { %v1909_v50 = vpop.f32.mrf.mxu0  ;;  %v2179_v53 = vpop.f32.mrf.mxu1 }
 0x208   : > { %v6626_v40 = vadd.f32 %v2155_v41, %v1909_v50  ;;  %5075 = vmatmul.mubr.f32.gmra.mxu0 %v7129_v52  ;;  %5107 = vmatmul.mubr.f32.gmra.mxu1 %v3259_v6 }
 0x209   : > { %v4819_v13 = vpop.f32.mrf.mxu0  ;;  %v4859_v63 = vpop.f32.mrf.mxu1  ;;  %5077 = vmatprep.mubr.f32.mxu0 %v7131_v62  ;;  %5109 = vmatprep.mubr.f32.mxu1 %v3269_v47 }
 0x20a   : > { %v6634_v1 = vadd.f32 %v4853_v2, %v4819_v13 }
 0x20b   : > { %v1929_v11 = vpop.f32.mrf.mxu0  ;;  %v2191_v27 = vpop.f32.mrf.mxu1 }
 0x20c   : > { %v6636_v39 = vadd.f32 %v2167_v23, %v1929_v11  ;;  %5078 = vmatmul.mubr.f32.gmra.mxu0 %v6449_v10  ;;  %5110 = vmatmul.mubr.f32.gmra.mxu1 %v3279_v38  ;;  %v7139_v38 = vld [vmem:[#allocation7_spill] sm:$0xff] }
 0x20d   : > { %v4822_v59 = vpop.f32.mrf.mxu0  ;;  %v4862_v6 = vpop.f32.mrf.mxu1  ;;  %5080 = vmatprep.mubr.f32.mxu0 %v7135_v5  ;;  %5140 = vmatprep.mubr.f32.mxu1 %v7137_v18  ;;  %v7145_v5 = vld [vmem:[#allocation15_spill] sm:$0xff] }
 0x20e   : > { %v6643_v55 = vadd.f32 %v4856_v54, %v4822_v59  ;;  %v7147_v59 = vld [vmem:[#allocation19_spill] sm:$0xff] }
 0x20f   : > { %v1949_v47 = vpop.f32.mrf.mxu0  ;;  %v2203_v56 = vpop.f32.mrf.mxu1 }
 0x210   : > { %v6645_v35 = vadd.f32 %v2179_v53, %v1949_v47  ;;  %5081 = vmatmul.mubr.f32.gmra.mxu0 %v6486_v25  ;;  %5141 = vmatmul.mubr.f32.vlgmr.msra.gmra.mxu1 %v7138_v31 }
 0x211   : > { %v4825_v10 = vpop.f32.mrf.mxu0  ;;  %v4865_v26 = vpop.f32.mrf.mxu1  ;;  %5083 = vmatprep.mubr.f32.mxu0 %v6504_v0  ;;  %5143 = vmatprep.mubr.f32.mxu1 %v7139_v38 }
 0x212   : > { %v6651_v4 = vadd.f32 %v4859_v63, %v4825_v10  ;;  %v7146_v63 = vld [vmem:[#allocation17_spill] sm:$0xff] }
 0x213   : > { %v1969_v58 = vpop.f32.mrf.mxu0  ;;  %v2215_v42 = vpop.f32.mrf.mxu1 }
 0x214   : > { %v6653_v41 = vadd.f32 %v2191_v27, %v1969_v58  ;;  %5084 = vmatmul.mubr.f32.gmra.mxu0 %v6524_v3  ;;  %5144 = vmatmul.mubr.f32.gmra.mxu1 %v7140_v22 }
 0x215   : > { %v4828_v52 = vpop.f32.mrf.mxu0  ;;  %v4868_v25 = vpop.f32.mrf.mxu1  ;;  %5114 = vmatprep.mubr.f32.mxu0 %v7137_v18  ;;  %5146 = vmatprep.mubr.f32.mxu1 %v7141_v28 }
 0x216   : > { %v6659_v60 = vadd.f32 %v4862_v6, %v4828_v52 }
 0x217   : > { %v1989_v0 = vpop.f32.mrf.mxu0  ;;  %v2227_v2 = vpop.f32.mrf.mxu1 }
 0x218   : > { %v6661_v62 = vadd.f32 %v2203_v56, %v1989_v0  ;;  %5115 = vmatmul.mubr.f32.vlgmr.msra.gmra.mxu0 %v7138_v31  ;;  %5147 = vmatmul.mubr.f32.gmra.mxu1 %v7142_v48  ;;  %v7148_v31 = vld [vmem:[#allocation22_spill] sm:$0xff] }
 0x219   : > { %v4831_v45 = vpop.f32.mrf.mxu0  ;;  %v4871_v3 = vpop.f32.mrf.mxu1  ;;  %5117 = vmatprep.mubr.f32.mxu0 %v7139_v38  ;;  %5149 = vmatprep.mubr.f32.mxu1 %v7143_v24  ;;  %v7149_v38 = vld [vmem:[#allocation24_spill] sm:$0xff] }
 0x21a   : > { %v6667_v46 = vadd.f32 %v4865_v26, %v4831_v45 }
 0x21b   : > { %v2009_v51 = vpop.f32.mrf.mxu0  ;;  %v2239_v23 = vpop.f32.mrf.mxu1 }
 0x21c   : > { %v6669_v43 = vadd.f32 %v2215_v42, %v2009_v51  ;;  %5118 = vmatmul.mubr.f32.gmra.mxu0 %v7140_v22  ;;  %5150 = vmatmul.mubr.f32.gmra.mxu1 %v7144_v16 }
 0x21d   : > { %v4834_v29 = vpop.f32.mrf.mxu0  ;;  %v4918_v54 = vpop.f32.mrf.mxu1  ;;  %5120 = vmatprep.mubr.f32.mxu0 %v7141_v28  ;;  %5152 = vmatprep.mubr.f32.mxu1 %v7145_v5 }
 0x21e   : > { %v6675_v21 = vadd.f32 %v4868_v25, %v4834_v29  ;;  %v7150_v25 = vld [vmem:[#allocation26_spill] sm:$0xff] }
 0x21f   : > { %v2029_v50 = vpop.f32.mrf.mxu0  ;;  %v2510_v53 = vpop.f32.mrf.mxu1 }
 0x220   : > { %v6677_v13 = vadd.f32 %v2227_v2, %v2029_v50  ;;  %5121 = vmatmul.mubr.f32.gmra.mxu0 %v7142_v48  ;;  %5153 = vmatmul.mubr.f32.gmra.mxu1 %v7146_v63 }
 0x221   : > { %v4837_v11 = vpop.f32.mrf.mxu0  ;;  %v4921_v27 = vpop.f32.mrf.mxu1  ;;  %5123 = vmatprep.mubr.f32.mxu0 %v7143_v24  ;;  %5155 = vmatprep.mubr.f32.mxu1 %v7147_v59 }
 0x222   : > { %v6683_v6 = vadd.f32 %v4871_v3, %v4837_v11 }
 0x223   : > { %v2049_v18 = vpop.f32.mrf.mxu0  ;;  %v2526_v47 = vpop.f32.mrf.mxu1 }
 0x224   : > { %v6685_v56 = vadd.f32 %v2239_v23, %v2049_v18  ;;  %5124 = vmatmul.mubr.f32.gmra.mxu0 %v7144_v16  ;;  %5156 = vmatmul.mubr.f32.gmra.mxu1 %v7148_v31 }
 0x225   : > { %v4884_v10 = vpop.f32.mrf.mxu0  ;;  %v4924_v26 = vpop.f32.mrf.mxu1  ;;  %5126 = vmatprep.mubr.f32.mxu0 %v7145_v5  ;;  %5158 = vmatprep.mubr.f32.mxu1 %v7149_v38 }
 0x226   : > { %v2335_v58 = vadd.f32 %v4884_v10, %v6624_v32 }
 0x227   : > { %v2327_v42 = vpop.f32.mrf.mxu0  ;;  %v2542_v22 = vpop.f32.mrf.mxu1 }
 0x228   : > { %v2328_v52 = vadd.f32 %v2327_v42, %v6626_v40  ;;  %5127 = vmatmul.mubr.f32.gmra.mxu0 %v7146_v63  ;;  %5159 = vmatmul.mubr.f32.gmra.mxu1 %v7150_v25  ;;  %v6695_v28 = vadd.f32 %v4918_v54, %v2335_v58 }
 0x229   : > { %v4887_v0 = vpop.f32.mrf.mxu0  ;;  %v4927_v2 = vpop.f32.mrf.mxu1  ;;  %5129 = vmatprep.mubr.f32.mxu0 %v7147_v59  ;;  %5161 = vmatprep.mubr.f32.mxu1 %v6498_v37 }
 0x22a   : > { %v2349_v48 = vadd.f32 %v4887_v0, %v6634_v1  ;;  %v6700_v45 = vadd.f32 %v2510_v53, %v2328_v52 }
 0x22b   : > { %v2341_v32 = vpop.f32.mrf.mxu0  ;;  %v2558_v3 = vpop.f32.mrf.mxu1 }
 0x22c   : > { %v2342_v40 = vadd.f32 %v2341_v32, %v6636_v39  ;;  %5130 = vmatmul.mubr.f32.gmra.mxu0 %v7148_v31  ;;  %5162 = vmatmul.mubr.f32.gmra.mxu1 %v6518_v49  ;;  %v6705_v24 = vadd.f32 %v4921_v27, %v2349_v48 }
 0x22d   : > { %v4890_v51 = vpop.f32.mrf.mxu0  ;;  %v4930_v23 = vpop.f32.mrf.mxu1  ;;  %5132 = vmatprep.mubr.f32.mxu0 %v7149_v38 }
 0x22e   : > { %v2363_v16 = vadd.f32 %v4890_v51, %v6643_v55  ;;  %v6709_v29 = vadd.f32 %v2526_v47, %v2342_v40 }
 0x22f   : > { %v2355_v1 = vpop.f32.mrf.mxu0  ;;  %v2574_v54 = vpop.f32.mrf.mxu1 }
 0x230   : > { %v2356_v5 = vadd.f32 %v2355_v1, %v6645_v35  ;;  %5133 = vmatmul.mubr.f32.gmra.mxu0 %v7150_v25  ;;  %v6713_v39 = vadd.f32 %v4924_v26, %v2363_v16 }
 0x231   : > { %v4893_v50 = vpop.f32.mrf.mxu0  ;;  %v4933_v53 = vpop.f32.mrf.mxu1  ;;  %5135 = vmatprep.mubr.f32.mxu0 %v6498_v37 }
 0x232   : > { %v2377_v63 = vadd.f32 %v4893_v50, %v6651_v4  ;;  %v6717_v11 = vadd.f32 %v2542_v22, %v2356_v5 }
 0x233   : > { %v2369_v27 = vpop.f32.mrf.mxu0  ;;  %v2590_v55 = vpop.f32.mrf.mxu1 }
 0x234   : > { %v2370_v59 = vadd.f32 %v2369_v27, %v6653_v41  ;;  %5136 = vmatmul.mubr.f32.gmra.mxu0 %v6518_v49  ;;  %v6721_v18 = vadd.f32 %v4927_v2, %v2377_v63 }
 0x235   : > { %v4896_v35 = vpop.f32.mrf.mxu0  ;;  %v4936_v47 = vpop.f32.mrf.mxu1 }
 0x236   : > { %v2391_v31 = vadd.f32 %v4896_v35, %v6659_v60  ;;  %v6724_v10 = vadd.f32 %v2558_v3, %v2370_v59 }
 0x237   : > { %v2383_v26 = vpop.f32.mrf.mxu0  ;;  %v2606_v37 = vpop.f32.mrf.mxu1 }
 0x238   : > { %v2384_v4 = vadd.f32 %v2383_v26, %v6661_v62  ;;  %v6727_v38 = vadd.f32 %v4930_v23, %v2391_v31 }
 0x239   : > { %v4899_v58 = vpop.f32.mrf.mxu0  ;;  %v4939_v42 = vpop.f32.mrf.mxu1 }
 0x23a   : > { %v2405_v41 = vadd.f32 %v4899_v58, %v6667_v46  ;;  %v6730_v22 = vadd.f32 %v2574_v54, %v2384_v4 }
 0x23b   : > { %v2397_v49 = vpop.f32.mrf.mxu0  ;;  %v2622_v52 = vpop.f32.mrf.mxu1 }
 0x23c   : > { %v2398_v25 = vadd.f32 %v2397_v49, %v6669_v43  ;;  %v6733_v0 = vadd.f32 %v4933_v53, %v2405_v41 }
 0x23d   : > { %v4902_v60 = vpop.f32.mrf.mxu0  ;;  %v4986_v2 = vpop.f32.mrf.mxu1 }
 0x23e   : > { %v2419_v48 = vadd.f32 %v4902_v60, %v6675_v21  ;;  %v6736_v32 = vadd.f32 %v2590_v55, %v2398_v25 }
 0x23f   : > { %v2411_v62 = vpop.f32.mrf.mxu0  ;;  %v2882_v3 = vpop.f32.mrf.mxu1 }
 0x240   : > { %v2412_v40 = vadd.f32 %v2411_v62, %v6677_v13  ;;  %v6739_v51 = vadd.f32 %v4936_v47, %v2419_v48 }
 0x241   : > { %v4905_v46 = vpop.f32.mrf.mxu0  ;;  %v4989_v23 = vpop.f32.mrf.mxu1 }
 0x242   : > { %v2433_v16 = vadd.f32 %v4905_v46, %v6683_v6  ;;  %v6742_v1 = vadd.f32 %v2606_v37, %v2412_v40 }
 0x243   : > { %v2425_v43 = vpop.f32.mrf.mxu0  ;;  %v2894_v54 = vpop.f32.mrf.mxu1 }
 0x244   : > { %v2426_v5 = vadd.f32 %v2425_v43, %v6685_v56  ;;  %v6745_v50 = vadd.f32 %v4939_v42, %v2433_v16 }
 0x245   : > { %v4952_v21 = vpop.f32.mrf.mxu0  ;;  %v4992_v53 = vpop.f32.mrf.mxu1 }
 0x246   : > { %v2723_v63 = vadd.f32 %v4952_v21, %v6695_v28  ;;  %v6748_v27 = vadd.f32 %v2622_v52, %v2426_v5 }
 0x247   : > { %v2716_v13 = vpop.f32.mrf.mxu0  ;;  %v2906_v55 = vpop.f32.mrf.mxu1 }
 0x248   : > { %v2889_v59 = vadd.f32 %v4986_v2, %v2723_v63  ;;  %v2717_v35 = vadd.f32 %v2716_v13, %v6700_v45 }
 0x249   : > { %v4955_v6 = vpop.f32.mrf.mxu0  ;;  %v4995_v47 = vpop.f32.mrf.mxu1 }
 0x24a   : > { %v6752_v31 = vmul.f32 %v2889_v59, %v6506_v20  ;;  %v2883_v26 = vadd.f32 %v2882_v3, %v2717_v35  ;;  %v2735_v56 = vadd.f32 %v4955_v6, %v6705_v24 }
 0x24b   : > { %v2728_v37 = vpop.f32.mrf.mxu0  ;;  %v2918_v4 = vpop.f32.mrf.mxu1 }
 0x24c   : > { %v6756_v58 = vmul.f32 %v2883_v26, %v6516_v61  ;;  %v2901_v28 = vadd.f32 %v4989_v23, %v2735_v56  ;;  %v2729_v42 = vadd.f32 %v2728_v37, %v6709_v29 }
 0x24d   : > { %v4958_v41 = vpop.f32.mrf.mxu0  ;;  %v4998_v49 = vpop.f32.mrf.mxu1 }
 0x24e   : > { %v6760_v45 = vmul.f32 %v2901_v28, %v6526_v57  ;;  %v2895_v52 = vadd.f32 %v2894_v54, %v2729_v42  ;;  %v2747_v20 = vadd.f32 %v4958_v41, %v6713_v39 }
 0x24f   : > { %v2740_v25 = vpop.f32.mrf.mxu0  ;;  %v2930_v60 = vpop.f32.mrf.mxu1 }
 0x250   : > { %v6764_v24 = vmul.f32 %v2895_v52, %v6537_v9  ;;  %v2913_v2 = vadd.f32 %v4992_v53, %v2747_v20  ;;  %v2741_v61 = vadd.f32 %v2740_v25, %v6717_v11 }
 0x251   : > { %v4961_v48 = vpop.f32.mrf.mxu0  ;;  %v5001_v62 = vpop.f32.mrf.mxu1 }
 0x252   : > { %v6768_v29 = vmul.f32 %v2913_v2, %v6542_v7  ;;  %v2907_v3 = vadd.f32 %v2906_v55, %v2741_v61  ;;  %v2759_v57 = vadd.f32 %v4961_v48, %v6721_v18 }
 0x253   : > { %v2752_v40 = vpop.f32.mrf.mxu0  ;;  %v2942_v9 = vpop.f32.mrf.mxu1 }
 0x254   : > { %v6772_v46 = vmul.f32 %v2907_v3, %v6554_v34  ;;  %v2925_v39 = vadd.f32 %v4995_v47, %v2759_v57  ;;  %v2753_v23 = vadd.f32 %v2752_v40, %v6724_v10 }
 0x255   : > { %v4964_v16 = vpop.f32.mrf.mxu0  ;;  %v5004_v34 = vpop.f32.mrf.mxu1 }
 0x256   : > { %v6776_v43 = vmul.f32 %v2925_v39, %v6559_v17  ;;  %v2919_v11 = vadd.f32 %v2918_v4, %v2753_v23  ;;  %v2771_v54 = vadd.f32 %v4964_v16, %v6727_v38 }
 0x257   : > { %v2764_v7 = vpop.f32.mrf.mxu0 }
 0x258   : > { %7151 = vst [vmem:[#allocation9_spill] sm:$0xff] %v6776_v43  ;;  %v6780_v5 = vmul.f32 %v2919_v11, %v6567_v30  ;;  %v2937_v18 = vadd.f32 %v4998_v49, %v2771_v54  ;;  %v2765_v21 = vadd.f32 %v2764_v7, %v6730_v22  ;;  %v2954_v30 = vpop.f32.mrf.mxu1 }
 0x259   : > { %v4967_v53 = vpop.f32.mrf.mxu0 }
 0x25a   : > { %7152 = vst [vmem:[#allocation14_spill] sm:$0xff] %v6780_v5  ;;  %v6784_v63 = vmul.f32 %v2937_v18, %v6573_v19  ;;  %v2931_v10 = vadd.f32 %v2930_v60, %v2765_v21  ;;  %v2783_v13 = vadd.f32 %v4967_v53, %v6733_v0 }
 0x25b   : > { %v2776_v17 = vpop.f32.mrf.mxu0 }
 0x25c   : > { %7153 = vst [vmem:[#allocation16_spill] sm:$0xff] %v6784_v63  ;;  %v6788_v55 = vmul.f32 %v2931_v10, %v6581_v33  ;;  %v2949_v38 = vadd.f32 %v5001_v62, %v2783_v13  ;;  %v2777_v59 = vadd.f32 %v2776_v17, %v6736_v32  ;;  %v5007_v33 = vpop.f32.mrf.mxu1 }
 0x25d   : > { %v4970_v35 = vpop.f32.mrf.mxu0 }
 0x25e   : > { %7154 = vst [vmem:[#allocation20_spill] sm:$0xff] %v6788_v55  ;;  %v6792_v6 = vmul.f32 %v2949_v38, %v6589_v14  ;;  %v2943_v22 = vadd.f32 %v2942_v9, %v2777_v59  ;;  %v2795_v47 = vadd.f32 %v4970_v35, %v6739_v51 }
 0x25f   : > { %v2788_v19 = vpop.f32.mrf.mxu0 }
 0x260   : > { %7155 = vst [vmem:[#allocation18_spill] sm:$0xff] %v6792_v6  ;;  %v6796_v26 = vmul.f32 %v2943_v22, %v6598_v44  ;;  %v2961_v0 = vadd.f32 %v5004_v34, %v2795_v47  ;;  %v2789_v56 = vadd.f32 %v2788_v19, %v6742_v1  ;;  %v2966_v44 = vpop.f32.mrf.mxu1 }
 0x261   : > { %v4973_v37 = vpop.f32.mrf.mxu0 }
 0x262   : > { %7156 = vst [vmem:[#allocation21_spill] sm:$0xff] %v6796_v26  ;;  %v6800_v4 = vmul.f32 %v2961_v0, %v6602_v12  ;;  %v2955_v32 = vadd.f32 %v2954_v30, %v2789_v56  ;;  %v2807_v28 = vadd.f32 %v4973_v37, %v6745_v50 }
 0x263   : > { %v2800_v14 = vpop.f32.mrf.mxu0 }
 0x264   : > { %7157 = vst [vmem:[#allocation23_spill] sm:$0xff] %v6800_v4  ;;  %v6804_v42 = vmul.f32 %v2955_v32, %v6610_v36  ;;  %v2973_v51 = vadd.f32 %v5007_v33, %v2807_v28  ;;  %v2801_v41 = vadd.f32 %v2800_v14, %v6748_v27 }
 0x266   : > { %7158 = vst [vmem:[#allocation25_spill] sm:$0xff] %v6804_v42  ;;  %v6808_v49 = vmul.f32 %v2973_v51, %v6614_v15  ;;  %v2967_v1 = vadd.f32 %v2966_v44, %v2801_v41 }
 0x268   : > { %7159 = vst [vmem:[#allocation5_spill] sm:$0xff] %v6808_v49  ;;  %v6811_v52 = vmul.f32 %v2967_v1, %v6622_v8 }
 0x26a   : > { %7160 = vst [vmem:[#allocation6_spill] sm:$0xff] %v6811_v52 }
 0x274   : > { %v6813_v12 = vpop.f32.mrf.mxu1 }
 0x276   : > { %v6815_v20 = vpop.f32.mrf.mxu1 }
 0x27c   : > { %v6817_v50 = vpop.f32.mrf.mxu1  ;;  %v5012_v25 = vpop.f32.mrf.mxu0 }
 0x27d   : > { %v3366_v5 = vadd.f32 %v6813_v12, %v5012_v25 }
 0x27e   : > { %v6819_v36 = vpop.f32.mrf.mxu1  ;;  %v3133_v60 = vpop.f32.mrf.mxu0 }
 0x284   : > { %v6821_v2 = vpop.f32.mrf.mxu1  ;;  %v6823_v27 = vpop.f32.mrf.mxu0 }
 0x286   : > { %v6825_v15 = vpop.f32.mrf.mxu1  ;;  %v6827_v61 = vpop.f32.mrf.mxu0 }
 0x287   : > { %v3372_v12 = vadd.f32 %v6819_v36, %v6827_v61 }
 0x28c   : > { %v6829_v8 = vpop.f32.mrf.mxu1  ;;  %v6831_v48 = vpop.f32.mrf.mxu0 }
 0x28e   : > { %v6833_v62 = vpop.f32.mrf.mxu1  ;;  %v6835_v3 = vpop.f32.mrf.mxu0 }
 0x294   : > { %v6837_v57 = vpop.f32.mrf.mxu1  ;;  %v6839_v40 = vpop.f32.mrf.mxu0 }
 0x295   : > { %v3402_v61 = vadd.f32 %v6829_v8, %v6839_v40 }
 0x296   : > { %v6841_v39 = vpop.f32.mrf.mxu1  ;;  %v6843_v23 = vpop.f32.mrf.mxu0 }
 0x29c   : > { %v6845_v9 = vpop.f32.mrf.mxu1  ;;  %v6847_v16 = vpop.f32.mrf.mxu0 }
 0x29e   : > { %v6849_v11 = vpop.f32.mrf.mxu1  ;;  %v6851_v54 = vpop.f32.mrf.mxu0 }
 0x2a4   : > { %v6853_v7 = vpop.f32.mrf.mxu1  ;;  %v6855_v18 = vpop.f32.mrf.mxu0 }
 0x2a5   : > { %7161 = vst [vmem:[#allocation7_spill] sm:$0xff] %v6853_v7 }
 0x2a6   : > { %v6857_v21 = vpop.f32.mrf.mxu1  ;;  %v6859_v34 = vpop.f32.mrf.mxu0 }
 0x2a7   : > { %7162 = vst [vmem:[#allocation8_spill] sm:$0xff] %v6857_v21 }
 0x2ac   : > { %v6861_v53 = vpop.f32.mrf.mxu1 }
 0x2ad   : > { %7163 = vst [vmem:[#allocation10_spill] sm:$0xff] %v6861_v53  ;;  %v6863_v10 = vpop.f32.mrf.mxu0 }
 0x2ae   : > { %7164 = vst [vmem:[#allocation11_spill] sm:$0xff] %v6863_v10  ;;  %v6865_v13 = vpop.f32.mrf.mxu1 }
 0x2af   : > { %7165 = vst [vmem:[#allocation12_spill] sm:$0xff] %v6865_v13  ;;  %v6867_v38 = vpop.f32.mrf.mxu0 }
 0x2b0   : > { %v5090_v17 = vpop.f32.mrf.mxu1  ;;  %7166 = vst [vmem:[#allocation13_spill] sm:$0xff] %v6867_v38 }
 0x2b2   : > { %v3702_v59 = vpop.f32.mrf.mxu1 }
 0x2b4   : > { %v6869_v30 = vpop.f32.mrf.mxu0  ;;  %v5093_v35 = vpop.f32.mrf.mxu1 }
 0x2b5   : > { %7167 = vst [vmem:[#allocation15_spill] sm:$0xff] %v6869_v30 }
 0x2b6   : > { %v6871_v22 = vpop.f32.mrf.mxu0  ;;  %v6873_v47 = vpop.f32.mrf.mxu1 }
 0x2b7   : > { %7168 = vst [vmem:[#allocation17_spill] sm:$0xff] %v6871_v22 }
 0x2b8   : > { %v5064_v19 = vpop.f32.mrf.mxu0  ;;  %v6875_v0 = vpop.f32.mrf.mxu1 }
 0x2b9   : > { %v3531_v38 = vadd.f32 %v5064_v19, %v3366_v5 }
 0x2ba   : > { %v3523_v56 = vpop.f32.mrf.mxu0  ;;  %v6877_v33 = vpop.f32.mrf.mxu1 }
 0x2bc   : > { %v5067_v37 = vpop.f32.mrf.mxu0  ;;  %v6879_v32 = vpop.f32.mrf.mxu1 }
 0x2be   : > { %v3537_v28 = vpop.f32.mrf.mxu0  ;;  %v6881_v14 = vpop.f32.mrf.mxu1 }
 0x2bf   : > { %v3538_v19 = vadd.f32 %v3537_v28, %v3372_v12  ;;  %v7181_v12 = vld [vmem:[#allocation11_spill] sm:$0xff] }
 0x2c0   : > { %v5070_v51 = vpop.f32.mrf.mxu0  ;;  %v6883_v41 = vpop.f32.mrf.mxu1 }
 0x2c2   : > { %v3551_v44 = vpop.f32.mrf.mxu0  ;;  %v6885_v1 = vpop.f32.mrf.mxu1 }
 0x2c3   : > { %7169 = vst [vmem:[#allocation19_spill] sm:$0xff] %v6885_v1 }
 0x2c4   : > { %v5073_v52 = vpop.f32.mrf.mxu0  ;;  %v6887_v49 = vpop.f32.mrf.mxu1 }
 0x2c5   : > { %7170 = vst [vmem:[#allocation22_spill] sm:$0xff] %v6887_v49 }
 0x2c6   : > { %v6889_v42 = vpop.f32.mrf.mxu0  ;;  %v6891_v4 = vpop.f32.mrf.mxu1 }
 0x2c7   : > { %7171 = vst [vmem:[#allocation24_spill] sm:$0xff] %v6891_v4 }
 0x2c8   : > { %v6893_v26 = vpop.f32.mrf.mxu0  ;;  %v6895_v6 = vpop.f32.mrf.mxu1 }
 0x2c9   : > { %7172 = vst [vmem:[#allocation26_spill] sm:$0xff] %v6895_v6 }
 0x2ca   : > { %v6897_v55 = vpop.f32.mrf.mxu0  ;;  %v6899_v13 = vpop.f32.mrf.mxu1 }
 0x2cb   : > { %7173 = vst [vmem:[#allocation27_spill] sm:$0xff] %v6899_v13  ;;  %v3360_v13 = vadd.f32 %v6815_v20, %v3133_v60  ;;  %v3390_v20 = vadd.f32 %v6821_v2, %v6831_v48 }
 0x2cc   : > { %v6901_v22 = vpop.f32.mrf.mxu0  ;;  %v6903_v63 = vpop.f32.mrf.mxu1 }
 0x2cd   : > { %7174 = vst [vmem:[#allocation28_spill] sm:$0xff] %v6903_v63 }
 0x2ce   : > { %v6905_v53 = vpop.f32.mrf.mxu0  ;;  %v6907_v30 = vpop.f32.mrf.mxu1 }
 0x2cf   : > { %7175 = vst [vmem:[#allocation29_spill] sm:$0xff] %v6905_v53  ;;  %7176 = vst [vmem:[#allocation30_spill] sm:$0xff] %v6907_v30  ;;  %v3378_v53 = vadd.f32 %v6817_v50, %v6823_v27  ;;  %v3524_v30 = vadd.f32 %v3523_v56, %v3360_v13  ;;  %v3384_v50 = vadd.f32 %v6825_v15, %v6835_v3 }
 0x2d0   : > { %v6910_v49 = vpop.f32.mrf.mxu0  ;;  %v5142_v4 = vpop.f32.mrf.mxu1  ;;  %v3559_v27 = vadd.f32 %v5070_v51, %v3390_v20 }
 0x2d1   : > { %7177 = vst [vmem:[#allocation31_spill] sm:$0xff] %v6910_v49  ;;  %v3545_v25 = vadd.f32 %v5067_v37, %v3378_v53  ;;  %v3703_v7 = vadd.f32 %v3702_v59, %v3524_v30  ;;  %v3552_v53 = vadd.f32 %v3551_v44, %v3384_v50  ;;  %v3420_v44 = vadd.f32 %v6849_v11, %v6859_v34 }
 0x2d2   : > { %v6913_v6 = vpop.f32.mrf.mxu0  ;;  %v4058_v21 = vpop.f32.mrf.mxu1 }
 0x2d3   : > { %7178 = vst [vmem:[#allocation32_spill] sm:$0xff] %v6913_v6  ;;  %v3711_v6 = vadd.f32 %v5090_v17, %v3531_v38  ;;  %v3727_v36 = vadd.f32 %v5093_v35, %v3545_v25  ;;  %v3573_v17 = vadd.f32 %v5073_v52, %v3402_v61  ;;  %v3735_v35 = vadd.f32 %v6877_v33, %v3552_v53  ;;  %v7182_v25 = vld [vmem:[#allocation7_spill] sm:$0xff] }
 0x2d4   : > { %v6916_v43 = vpop.f32.mrf.mxu0  ;;  %v5145_v63 = vpop.f32.mrf.mxu1  ;;  %v3438_v20 = vadd.f32 %v7182_v25, %v7181_v12  ;;  %v7205_v25 = vld [vmem:[#allocation28_spill] sm:$0xff] }
 0x2d5   : > { %7179 = vst [vmem:[#allocation33_spill] sm:$0xff] %v6916_v43  ;;  %v3759_v37 = vadd.f32 %v6879_v32, %v3573_v17 }
 0x2d6   : > { %v6920_v1 = vpop.f32.mrf.mxu0  ;;  %v4070_v49 = vpop.f32.mrf.mxu1  ;;  %v7184_v11 = vld [vmem:[#allocation29_spill] sm:$0xff] }
 0x2d7   : > { %7180 = vst [vmem:[#allocation34_spill] sm:$0xff] %v6920_v1  ;;  %v3594_v34 = vadd.f32 %v7184_v11, %v3420_v44  ;;  %v7203_v44 = vld [vmem:[#allocation18_spill] sm:$0xff] }
 0x2d8   : > { %v5116_v5 = vpop.f32.mrf.mxu0  ;;  %v5148_v60 = vpop.f32.mrf.mxu1 }
 0x2d9   : > { %v3903_v43 = vadd.f32 %v5116_v5, %v3711_v6 }
 0x2da   : > { %v3896_v13 = vpop.f32.mrf.mxu0  ;;  %v4082_v56 = vpop.f32.mrf.mxu1 }
 0x2db   : > { %v4065_v1 = vadd.f32 %v5142_v4, %v3903_v43  ;;  %v3897_v10 = vadd.f32 %v3896_v13, %v3703_v7  ;;  %v3719_v43 = vadd.f32 %v6873_v47, %v3538_v19  ;;  %v3396_v4 = vadd.f32 %v6833_v62, %v6843_v23  ;;  %v7186_v13 = vld [vmem:[#allocation13_spill] sm:$0xff] }
 0x2dc   : > { %v5119_v6 = vpop.f32.mrf.mxu0  ;;  %v5151_v2 = vpop.f32.mrf.mxu1  ;;  %v3743_v7 = vadd.f32 %v6875_v0, %v3559_v27 }
 0x2dd   : > { %v4169_v15 = vmul.f32 %v6752_v31, %v4065_v1  ;;  %v4059_v48 = vadd.f32 %v4058_v21, %v3897_v10  ;;  %v3915_v3 = vadd.f32 %v5119_v6, %v3727_v36  ;;  %v3414_v21 = vadd.f32 %v6837_v57, %v6847_v16  ;;  %v7188_v36 = vld [vmem:[#allocation31_spill] sm:$0xff]  ;;  %v7189_v6 = vld [vmem:[#allocation14_spill] sm:$0xff] }
 0x2de   : > { %v3908_v8 = vpop.f32.mrf.mxu0  ;;  %v4094_v40 = vpop.f32.mrf.mxu1  ;;  %v3566_v62 = vadd.f32 %v6889_v42, %v3396_v4  ;;  %v3615_v61 = vadd.f32 %v7188_v36, %v3438_v20  ;;  %v7191_v4 = vld [vmem:[#allocation15_spill] sm:$0xff] }
 0x2df   : > { %4186 = vst.msk [vmem:[%s6933_s23 + $0x8] sm:$0xff] %vm4184_vm10, %v4169_v15  ;;  %v4168_v38 = vmul.f32 %v6756_v58, %v4059_v48  ;;  %v4077_v59 = vadd.f32 %v5145_v63, %v3915_v3  ;;  %v3909_v31 = vadd.f32 %v3908_v8, %v3719_v43  ;;  %v3408_v58 = vadd.f32 %v6841_v39, %v6851_v54  ;;  %v7190_v3 = vld [vmem:[#allocation22_spill] sm:$0xff] }
 0x2e0   : > { %v5122_v10 = vpop.f32.mrf.mxu0  ;;  %v5154_v30 = vpop.f32.mrf.mxu1  ;;  %v3587_v63 = vadd.f32 %v6893_v26, %v3414_v21  ;;  %v7192_v8 = vld [vmem:[#allocation10_spill] sm:$0xff] }
 0x2e1   : > { %4185 = vst.msk [vmem:[%s6933_s23] sm:$0xff] %vm4184_vm10, %v4168_v38  ;;  %v4171_v52 = vmul.f32 %v6760_v45, %v4077_v59  ;;  %v4071_v23 = vadd.f32 %v4070_v49, %v3909_v31  ;;  %v3927_v47 = vadd.f32 %v5122_v10, %v3743_v7  ;;  %v3426_v45 = vadd.f32 %v6845_v9, %v6855_v18  ;;  %v7194_v31 = vld [vmem:[#allocation16_spill] sm:$0xff] }
 0x2e2   : > { %v3920_v0 = vpop.f32.mrf.mxu0  ;;  %v4106_v57 = vpop.f32.mrf.mxu1  ;;  %v3580_v49 = vadd.f32 %v6897_v55, %v3408_v58  ;;  %v3775_v1 = vadd.f32 %v6883_v41, %v3587_v63  ;;  %v7185_v41 = vld [vmem:[#allocation9_spill] sm:$0xff]  ;;  %v3450_v7 = vadd.f32 %v7192_v8, %v7191_v4  ;;  %v7198_v63 = vld [vmem:[#allocation26_spill] sm:$0xff] }
 0x2e3   : > { %4188 = vst.msk [vmem:[%s6933_s23 + $0x18] sm:$0xff] %vm4184_vm10, %v4171_v52  ;;  %v4170_v16 = vmul.f32 %v6764_v24, %v4071_v23  ;;  %v4089_v33 = vadd.f32 %v5148_v60, %v3927_v47  ;;  %v3921_v42 = vadd.f32 %v3920_v0, %v3735_v35  ;;  %v3751_v24 = vadd.f32 %v6881_v14, %v3566_v62  ;;  %v7183_v60 = vld [vmem:[#allocation19_spill] sm:$0xff]  ;;  %v7195_v62 = vld [vmem:[#allocation24_spill] sm:$0xff]  ;;  %v7196_v52 = vld [vmem:[#allocation17_spill] sm:$0xff] }
 0x2e4   : > { %v5125_v28 = vpop.f32.mrf.mxu0  ;;  %v5157_v39 = vpop.f32.mrf.mxu1  ;;  %v3601_v9 = vadd.f32 %v6901_v22, %v3426_v45  ;;  %v3767_v19 = vadd.f32 %v7183_v60, %v3580_v49  ;;  %v7197_v23 = vld [vmem:[#allocation12_spill] sm:$0xff]  ;;  %v3807_v0 = vadd.f32 %v7198_v63, %v3615_v61  ;;  %v7209_v61 = vld [vmem:[#allocation5_spill] sm:$0xff] }
 0x2e5   : > { %4187 = vst.msk [vmem:[%s6933_s23 + $0x10] sm:$0xff] %vm4184_vm10, %v4170_v16  ;;  %v4173_v26 = vmul.f32 %v6768_v29, %v4089_v33  ;;  %v4083_v54 = vadd.f32 %v4082_v56, %v3921_v42  ;;  %v3939_v51 = vadd.f32 %v5125_v28, %v3759_v37  ;;  %v3444_v47 = vadd.f32 %v7197_v23, %v7196_v52  ;;  %v7199_v16 = vld [vmem:[#allocation33_spill] sm:$0xff]  ;;  %v7200_v42 = vld [vmem:[#allocation20_spill] sm:$0xff] }
 0x2e6   : > { %v3932_v32 = vpop.f32.mrf.mxu0  ;;  %v4118_v5 = vpop.f32.mrf.mxu1  ;;  %v3791_v43 = vadd.f32 %v7190_v3, %v3601_v9  ;;  %v3629_v33 = vadd.f32 %v7199_v16, %v3450_v7 }
 0x2e7   : > { %4190 = vst.msk [vmem:[%s6933_s23 + $0x28] sm:$0xff] %vm4184_vm10, %v4173_v26  ;;  %v4172_v55 = vmul.f32 %v6772_v46, %v4083_v54  ;;  %v4101_v18 = vadd.f32 %v5151_v2, %v3939_v51  ;;  %v3933_v29 = vadd.f32 %v3932_v32, %v3751_v24  ;;  %v7187_v46 = vld [vmem:[#allocation8_spill] sm:$0xff]  ;;  %v7201_v26 = vld [vmem:[#allocation27_spill] sm:$0xff]  ;;  %v7202_v51 = vld [vmem:[#allocation34_spill] sm:$0xff] }
 0x2e8   : > { %v5128_v14 = vpop.f32.mrf.mxu0  ;;  %v3432_v56 = vadd.f32 %v7187_v46, %v7186_v13  ;;  %v5160_v38 = vpop.f32.mrf.mxu1  ;;  %v3622_v24 = vadd.f32 %v7202_v51, %v3444_v47  ;;  %v3823_v20 = vadd.f32 %v7205_v25, %v3629_v33 }
 0x2e9   : > { %4189 = vst.msk [vmem:[%s6933_s23 + $0x20] sm:$0xff] %vm4184_vm10, %v4172_v55  ;;  %v4175_v22 = vmul.f32 %v7185_v41, %v4101_v18  ;;  %v4095_v50 = vadd.f32 %v4094_v40, %v3933_v29  ;;  %v3951_v27 = vadd.f32 %v5128_v14, %v3775_v1  ;;  %v7193_v40 = vld [vmem:[#allocation32_spill] sm:$0xff]  ;;  %v7204_v18 = vld [vmem:[#allocation21_spill] sm:$0xff]  ;;  %v7207_v41 = vld [vmem:[#allocation30_spill] sm:$0xff] }
 0x2ea   : > { %v3944_v53 = vpop.f32.mrf.mxu0  ;;  %v3608_v17 = vadd.f32 %v7193_v40, %v3432_v56  ;;  %v4130_v28 = vpop.f32.mrf.mxu1 }
 0x2eb   : > { %4192 = vst.msk [vmem:[%s6933_s23 + $0x38] sm:$0xff] %vm4184_vm10, %v4175_v22  ;;  %v4174_v2 = vmul.f32 %v7189_v6, %v4095_v50  ;;  %v4113_v15 = vadd.f32 %v5154_v30, %v3951_v27  ;;  %v3945_v48 = vadd.f32 %v3944_v53, %v3767_v19  ;;  %v3783_v30 = vadd.f32 %v7195_v62, %v3594_v34  ;;  %v7206_v19 = vld [vmem:[#allocation23_spill] sm:$0xff]  ;;  %v7208_v27 = vld [vmem:[#allocation25_spill] sm:$0xff] }
 0x2ec   : > { %v5131_v59 = vpop.f32.mrf.mxu0  ;;  %v3799_v54 = vadd.f32 %v7201_v26, %v3608_v17  ;;  %v5163_v14 = vpop.f32.mrf.mxu1  ;;  %v3815_v22 = vadd.f32 %v7207_v41, %v3622_v24 }
 0x2ed   : > { %4191 = vst.msk [vmem:[%s6933_s23 + $0x30] sm:$0xff] %vm4184_vm10, %v4174_v2  ;;  %v4177_v21 = vmul.f32 %v7194_v31, %v4113_v15  ;;  %v4107_v10 = vadd.f32 %v4106_v57, %v3945_v48  ;;  %v3963_v35 = vadd.f32 %v5131_v59, %v3791_v43  ;;  %v7210_v2 = vld [vmem:[#allocation6_spill] sm:$0xff] }
 0x2ee   : > { %v3956_v58 = vpop.f32.mrf.mxu0  ;;  %v4142_v36 = vpop.f32.mrf.mxu1 }
 0x2ef   : > { %4194 = vst.msk [vmem:[%s6933_s23 + $0x48] sm:$0xff] %vm4184_vm10, %v4177_v21  ;;  %v4176_v37 = vmul.f32 %v7200_v42, %v4107_v10  ;;  %v4125_v45 = vadd.f32 %v5157_v39, %v3963_v35  ;;  %v3957_v49 = vadd.f32 %v3956_v58, %v3783_v30 }
 0x2f0   : > { %v5134_v57 = vpop.f32.mrf.mxu0 }
 0x2f1   : > { %4193 = vst.msk [vmem:[%s6933_s23 + $0x40] sm:$0xff] %vm4184_vm10, %v4176_v37  ;;  %v4179_v32 = vmul.f32 %v7203_v44, %v4125_v45  ;;  %v4119_v1 = vadd.f32 %v4118_v5, %v3957_v49  ;;  %v3975_v9 = vadd.f32 %v5134_v57, %v3807_v0 }
 0x2f2   : > { %v3968_v55 = vpop.f32.mrf.mxu0 }
 0x2f3   : > { %4196 = vst.msk [vmem:[%s6933_s23 + $0x58] sm:$0xff] %vm4184_vm10, %v4179_v32  ;;  %v4178_v39 = vmul.f32 %v7204_v18, %v4119_v1  ;;  %v4137_v29 = vadd.f32 %v5160_v38, %v3975_v9  ;;  %v3969_v12 = vadd.f32 %v3968_v55, %v3799_v54 }
 0x2f4   : > { %v5137_v60 = vpop.f32.mrf.mxu0 }
 0x2f5   : > { %4195 = vst.msk [vmem:[%s6933_s23 + $0x50] sm:$0xff] %vm4184_vm10, %v4178_v39  ;;  %v4181_v5 = vmul.f32 %v7206_v19, %v4137_v29  ;;  %v4131_v11 = vadd.f32 %v4130_v28, %v3969_v12  ;;  %v3987_v34 = vadd.f32 %v5137_v60, %v3823_v20 }
 0x2f6   : > { %v3980_v50 = vpop.f32.mrf.mxu0 }
 0x2f7   : > { %4198 = vst.msk [vmem:[%s6933_s23 + $0x68] sm:$0xff] %vm4184_vm10, %v4181_v5  ;;  %v4180_v13 = vmul.f32 %v7208_v27, %v4131_v11  ;;  %v4149_v46 = vadd.f32 %v5163_v14, %v3987_v34  ;;  %v3981_v56 = vadd.f32 %v3980_v50, %v3815_v22 }
 0x2f9   : > { %4197 = vst.msk [vmem:[%s6933_s23 + $0x60] sm:$0xff] %vm4184_vm10, %v4180_v13  ;;  %v4183_v53 = vmul.f32 %v7209_v61, %v4149_v46  ;;  %v4143_v6 = vadd.f32 %v4142_v36, %v3981_v56 }
 0x2fb   : > { %4200 = vst.msk [vmem:[%s6933_s23 + $0x78] sm:$0xff] %vm4184_vm10, %v4183_v53  ;;  %v4182_v15 = vmul.f32 %v7210_v2, %v4143_v6 }
 0x2fd   : > { %4199 = vst.msk [vmem:[%s6933_s23 + $0x70] sm:$0xff] %vm4184_vm10, %v4182_v15 }
 0x2fe PF: > { %s16_s18 = sadd.s32 1, %s5226_s18  }
 0x2ff   : > { %p13_p2 = scmp.ge.s32.totalorder %s16_s18, 4  }
 0x301   :  { %15 = sbr.rel (!%p13_p2) target bundleno = 1 (0x1), region = 75 }
 0x306   :  { %4223 = vsyncpa [#allocation3], 1 }
 0x307   :  { %4225 = vsyncpa [#allocation3 + $0x1], 1 }

</bundles_post_ra>
